<compile_context>
chip_gen: v6e
topology: v6e:2x2x1
jax: 0.10.0
libtpu: 0.0.40
codegen_flags: <defaults>
</compile_context>

<pallas_src>
from functools import partial

import jax
import jax.numpy as jnp
from jax.experimental import pallas as pl
from jax.experimental.pallas import tpu as pltpu


# ------------------------------ Fused kernel --------------------------------

def _fused_vgae_kernel(alpha, dims,
                       x_ref, pv_ref, w1_ref, w2_ref, wg23_ref, wf_ref, wm_ref,
                       adj_hbm,
                       out_ref,
                       adj_vmem, sem):
    f32 = jnp.float32
    bf16 = jnp.bfloat16
    F1, F2, G1, G2, D, K = dims

    # Kick off the adjacency HBM -> VMEM DMA (single buffer); it overlaps with
    # the feature encoder below, which does not touch the graph.
    adj_cp = pltpu.make_async_copy(adj_hbm, adj_vmem, sem.at[0])
    adj_cp.start()

    # Packed per-feature parameter rows: static views of the (10, 128) slab.
    s1 = pv_ref[0:1, 0:F1]
    sh1 = pv_ref[1:2, 0:F1]
    s2 = pv_ref[2:3, 0:F2]
    sh2 = pv_ref[3:4, 0:F2]
    sg1 = pv_ref[4:5, 0:G1]
    shg1 = pv_ref[5:6, 0:G1]
    sg23 = pv_ref[6:7, 0:2 * G2]
    shg23 = pv_ref[7:8, 0:2 * G2]
    bd = pv_ref[8:9, 0:D]
    cc = pv_ref[9:10, 0:K]

    # ---- feature encoder: (Linear -> BN(eval) -> ReLU -> Dropout[id]) x2 -----
    # mask-token add folded into the first matmul via x_aug=[x|mask], W1_aug=[W1; tok@W1]
    h1 = jnp.maximum(
        jnp.dot(x_ref[...], w1_ref[...], preferred_element_type=f32) * s1 + sh1,
        0.0)
    feat_x = jnp.maximum(
        jnp.dot(h1.astype(bf16), w2_ref[...], preferred_element_type=f32)
        * s2 + sh2, 0.0)

    # All feat_x consumers in one matmul: [Wg1 | Wd_feat | C_feat^T] (lane-padded).
    fproj = jnp.dot(feat_x.astype(bf16), wf_ref[...], preferred_element_type=f32)

    # ---- normalized-adjacency aggregation (single degree reduce) -------------
    adj_cp.wait()
    adj = adj_vmem[...]
    deg = jnp.sum(adj, axis=1, keepdims=True) + 1.0   # symmetric: rowsum == colsum
    dinv = jax.lax.rsqrt(deg)                         # D^-1/2      (N, 1)
    dinv2 = dinv * dinv                               # D^-1 (self-loop term)
    a_bf = adj.astype(bf16)                           # bf16 MXU operand

    def agg(h):
        # D^-1/2 (A+I) D^-1/2 @ h  ==  dinv * (A @ (dinv * h)) + (1/deg) * h
        hs = (dinv * h).astype(bf16)
        return dinv * jnp.dot(a_bf, hs, preferred_element_type=f32) + dinv2 * h

    # ---- gc1: relu(BN(A_hat @ (feat_x @ Wg1) + b)) ---------------------------
    hidden1 = jnp.maximum(agg(fproj[:, 0:G1]) * sg1 + shg1, 0.0)

    # ---- gc2 / gc3 fused: one XW + one aggregation -> mu || logvar -----------
    mulv = jnp.maximum(
        agg(jnp.dot(hidden1.astype(bf16), wg23_ref[...],
                    preferred_element_type=f32)) * sg23 + shg23, 0.0)
    mu = mulv[:, 0:G2]                 # reparameterize() == mu in eval mode
    logvar = mulv[:, G2:2 * G2]

    # All gnn_z (== mu) consumers in one matmul: [Wd_gnn | C_gnn^T].
    mproj = jnp.dot(mu.astype(bf16), wm_ref[...], preferred_element_type=f32)

    # ---- decoder GCNConv (no BN / ReLU): A_hat @ (z @ Wd) + bd ----------------
    # z = [feat_x | mu] is never concatenated: z @ Wd is split across fproj/mproj.
    de = agg(fproj[:, G1:G1 + D] + mproj[:, 0:D]) + bd

    # ---- DEC soft assignment q ------------------------------------------------
    cross = fproj[:, G1 + D:G1 + D + K] + mproj[:, D:D + K]        # z @ C^T
    zz = (jnp.sum(feat_x * feat_x, axis=1, keepdims=True)
          + jnp.sum(mu * mu, axis=1, keepdims=True))
    dist2 = jnp.maximum(zz - 2.0 * cross + cc, 0.0)   # fp32 cancellation guard
    base = 1.0 + dist2 * (1.0 / alpha) + 1e-8
    expo = (alpha + 1.0) / 2.0
    if expo == 1.0:                     # static: pow skipped for alpha == 1
        q = pl.reciprocal(base, approx=True)
    else:
        q = jnp.exp(-expo * jnp.log(base))
    q = q / jnp.sum(q, axis=1, keepdims=True)         # exact row normalization

    # ---- single lane-dense output slab (static slice writes, zero pad) -------
    out_ref[...] = jnp.zeros_like(out_ref)
    o = 0
    out_ref[:, o:o + F2] = feat_x              # slab[:, :F2]      == feat_x == z[:, :F2]
    o += F2
    out_ref[:, o:o + G2] = mu                  # slab[:, F2:F2+G2] == mu == gnn_z == z[:, F2:]
    o += G2
    out_ref[:, o:o + G2] = logvar
    o += G2
    out_ref[:, o:o + D] = de
    o += D
    out_ref[:, o:o + K] = q


# --------------------------------- Params ------------------------------------

def init_params(key, input_dim, feat_hidden1=64, feat_hidden2=16,
                gcn_hidden1=64, gcn_hidden2=16, dec_cluster_n=20):
    latent_dim = gcn_hidden2 + feat_hidden2
    keys = jax.random.split(key, 7)

    def lin(k, fi, fo):
        kw, kb = jax.random.split(k)
        bound = 1.0 / (fi ** 0.5)
        W = jax.random.uniform(kw, (fi, fo), jnp.float32, -bound, bound)
        b = jax.random.uniform(kb, (fo,), jnp.float32, -bound, bound)
        return W, b

    def bn_eval(dim, eps):
        gamma = jnp.ones((dim,), jnp.float32)
        beta = jnp.zeros((dim,), jnp.float32)
        rm = jnp.zeros((dim,), jnp.float32)
        rv = jnp.ones((dim,), jnp.float32)
        scale = gamma / jnp.sqrt(rv + eps)
        shift = beta - rm * scale
        return scale, shift

    p = {}
    p["W1"], p["b1"] = lin(keys[0], input_dim, feat_hidden1)
    p["bn1_scale"], p["bn1_shift"] = bn_eval(feat_hidden1, 0.001)
    p["W2"], p["b2"] = lin(keys[1], feat_hidden1, feat_hidden2)
    p["bn2_scale"], p["bn2_shift"] = bn_eval(feat_hidden2, 0.001)
    p["Wg1"], p["bg1"] = lin(keys[2], feat_hidden2, gcn_hidden1)
    p["bng1_scale"], p["bng1_shift"] = bn_eval(gcn_hidden1, 1e-5)
    p["Wg2"], p["bg2"] = lin(keys[3], gcn_hidden1, gcn_hidden2)
    p["bng2_scale"], p["bng2_shift"] = bn_eval(gcn_hidden2, 1e-5)
    p["Wg3"], p["bg3"] = lin(keys[4], gcn_hidden1, gcn_hidden2)
    p["bng3_scale"], p["bng3_shift"] = bn_eval(gcn_hidden2, 1e-5)
    p["Wd"], p["bd"] = lin(keys[5], latent_dim, input_dim)
    std = (2.0 / (dec_cluster_n + latent_dim)) ** 0.5
    p["cluster_layer"] = jax.random.normal(
        keys[6], (dec_cluster_n, latent_dim), jnp.float32) * std
    p["enc_mask_token"] = jnp.zeros((1, input_dim), jnp.float32)
    return p


# --------------------------------- Glue ---------------------------------------

def _pad_row(v, width=128):
    v = jnp.asarray(v, jnp.float32).reshape(-1)
    return jnp.pad(v, (0, width - v.shape[0]))


def vgae_forward(params, x, adj, mask_key, mask_rate=0.2, alpha=1.0):
    N, D = x.shape
    F1 = params["W1"].shape[1]
    F2 = params["W2"].shape[1]
    G1 = params["Wg1"].shape[1]
    G2 = params["Wg2"].shape[1]
    K = params["cluster_layer"].shape[0]
    bf16 = jnp.bfloat16
    assert max(F1, G1, 2 * G2, D, K) <= 128

    # --- encoding_mask_noise: random node mask (data-dependent, JAX glue) -----
    perm = jax.random.permutation(mask_key, N)
    num_mask = int(mask_rate * N)
    mask_nodes = perm[:num_mask]
    mask_col = jnp.zeros((N, 1), jnp.float32).at[mask_nodes, 0].set(1.0)

    # --- fold eval-mode BatchNorm + Linear/GCN bias into (scale, shift) -------
    def fold(scale, shift, b):
        return scale, b * scale + shift

    s1, sh1 = fold(params["bn1_scale"], params["bn1_shift"], params["b1"])
    s2, sh2 = fold(params["bn2_scale"], params["bn2_shift"], params["b2"])
    sg1, shg1 = fold(params["bng1_scale"], params["bng1_shift"], params["bg1"])
    sg2, shg2 = fold(params["bng2_scale"], params["bng2_shift"], params["bg2"])
    sg3, shg3 = fold(params["bng3_scale"], params["bng3_shift"], params["bg3"])
    sg23 = jnp.concatenate([sg2, sg3])
    shg23 = jnp.concatenate([shg2, shg3])
    cc = jnp.sum(params["cluster_layer"] ** 2, axis=1)          # (K,)

    # --- one packed (10, 128) f32 parameter slab (one DMA instead of 11) ------
    pvec = jnp.stack([_pad_row(s1), _pad_row(sh1), _pad_row(s2), _pad_row(sh2),
                      _pad_row(sg1), _pad_row(shg1), _pad_row(sg23),
                      _pad_row(shg23), _pad_row(params["bd"]), _pad_row(cc)])

    # --- packed bf16 weight slabs ----------------------------------------------
    # mask-token add folded into the first matmul: x_aug=[x|mask], W1_aug=[W1; tok@W1]
    tok_w1 = params["enc_mask_token"] @ params["W1"]             # (1, F1)
    d_aug = ((D + 1 + 7) // 8) * 8
    w1_aug = jnp.concatenate([params["W1"], tok_w1], axis=0)
    w1_aug = jnp.pad(w1_aug, ((0, d_aug - (D + 1)), (0, 0))).astype(bf16)
    x_aug = jnp.concatenate([x, mask_col], axis=1)
    x_aug = jnp.pad(x_aug, ((0, 0), (0, d_aug - (D + 1)))).astype(bf16)

    w2 = params["W2"].astype(bf16)                               # (F1, F2)
    wg23 = jnp.concatenate([params["Wg2"], params["Wg3"]],
                           axis=1).astype(bf16)                  # (G1, 2*G2)

    # feat_x consumers: gc1 weight | decoder rows (feat part) | cluster rows^T
    wf = jnp.concatenate([params["Wg1"], params["Wd"][:F2],
                          params["cluster_layer"][:, :F2].T], axis=1)
    wf_w = -(-(G1 + D + K) // 128) * 128
    wf = jnp.pad(wf, ((0, 0), (0, wf_w - (G1 + D + K)))).astype(bf16)
    # gnn_z (mu) consumers: decoder rows (gnn part) | cluster rows^T
    wm = jnp.concatenate([params["Wd"][F2:],
                          params["cluster_layer"][:, F2:].T], axis=1).astype(bf16)

    tot = F2 + 2 * G2 + D + K
    slab_w = -(-tot // 128) * 128
    dims = (F1, F2, G1, G2, D, K)
    vmem_limit = int(min(100 * 2 ** 20, 6 * N * N + 16 * 2 ** 20))

    slab = pl.pallas_call(
        partial(_fused_vgae_kernel, float(alpha), dims),
        out_shape=jax.ShapeDtypeStruct((N, slab_w), jnp.float32),
        grid=(1,),
        in_specs=[pl.BlockSpec(x_aug.shape, lambda i: (0, 0)),
                  pl.BlockSpec(pvec.shape, lambda i: (0, 0)),
                  pl.BlockSpec(w1_aug.shape, lambda i: (0, 0)),
                  pl.BlockSpec(w2.shape, lambda i: (0, 0)),
                  pl.BlockSpec(wg23.shape, lambda i: (0, 0)),
                  pl.BlockSpec(wf.shape, lambda i: (0, 0)),
                  pl.BlockSpec(wm.shape, lambda i: (0, 0)),
                  pl.BlockSpec(memory_space=pl.ANY)],           # adj stays in HBM
        out_specs=pl.BlockSpec((N, slab_w), lambda i: (0, 0)),
        scratch_shapes=[pltpu.VMEM((N, N), jnp.float32),        # single adj buffer
                        pltpu.SemaphoreType.DMA((1,))],
        compiler_params=pltpu.CompilerParams(
            dimension_semantics=("arbitrary",),
            vmem_limit_bytes=vmem_limit),
    )(x_aug, pvec, w1_aug, w2, wg23, wf, wm, adj.astype(jnp.float32))

    feat_x = slab[:, 0:F2]
    mu = slab[:, F2:F2 + G2]
    logvar = slab[:, F2 + G2:F2 + 2 * G2]
    z = slab[:, 0:F2 + G2]                      # concat(feat_x, gnn_z), contiguous
    de_feat = slab[:, F2 + 2 * G2:F2 + 2 * G2 + D]
    q = slab[:, F2 + 2 * G2 + D:F2 + 2 * G2 + D + K]
    gnn_z = mu                                  # reparameterize() == mu in eval

    # data-dependent row gathers kept in plain JAX glue
    x_init = jnp.take(x, mask_nodes, axis=0) + params["enc_mask_token"]
    x_rec = jnp.take(de_feat, mask_nodes, axis=0)
    return z, mu, logvar, de_feat, q, feat_x, gnn_z, x_init, x_rec


# -------------------------- Pure-JAX f32 reference ---------------------------

def ref_forward(p, x, adj, mask_col, alpha=1.0):
    n = x.shape[0]
    x_m = x + mask_col * p["enc_mask_token"]
    h1 = jax.nn.relu((x_m @ p["W1"] + p["b1"]) * p["bn1_scale"] + p["bn1_shift"])
    feat_x = jax.nn.relu((h1 @ p["W2"] + p["b2"]) * p["bn2_scale"] + p["bn2_shift"])
    a = adj + jnp.eye(n, dtype=adj.dtype)
    dinv = 1.0 / jnp.sqrt(jnp.sum(a, axis=1))
    a_hat = dinv[:, None] * a * dinv[None, :]
    hidden1 = jax.nn.relu((a_hat @ (feat_x @ p["Wg1"]) + p["bg1"])
                          * p["bng1_scale"] + p["bng1_shift"])
    mu = jax.nn.relu((a_hat @ (hidden1 @ p["Wg2"]) + p["bg2"])
                     * p["bng2_scale"] + p["bng2_shift"])
    logvar = jax.nn.relu((a_hat @ (hidden1 @ p["Wg3"]) + p["bg3"])
                         * p["bng3_scale"] + p["bng3_shift"])
    z = jnp.concatenate([feat_x, mu], axis=1)
    de = a_hat @ (z @ p["Wd"]) + p["bd"]
    dist2 = jnp.sum((z[:, None, :] - p["cluster_layer"][None, :, :]) ** 2, axis=2)
    q = 1.0 / (1.0 + dist2 / alpha + 1e-8)
    q = q ** ((alpha + 1.0) / 2.0)
    q = q / jnp.sum(q, axis=1, keepdims=True)
    return z, mu, logvar, de, q, feat_x


# --------------------------------- Main ---------------------------------------

if __name__ == "__main__":
    key = jax.random.PRNGKey(0)
    k_x, k_adj, k_p, k_mask = jax.random.split(key, 4)

    N, input_dim = 64, 32
    feat_hidden2, gcn_hidden2, dec_cluster_n = 16, 16, 20
    latent_dim = feat_hidden2 + gcn_hidden2

    x = jax.random.normal(k_x, (N, input_dim), jnp.float32)
    # random symmetric 0/1 adjacency (no self loops)
    up = (jax.random.uniform(k_adj, (N, N)) < 0.1).astype(jnp.float32)
    adj = jnp.triu(up, k=1)
    adj = adj + adj.T

    params = init_params(k_p, input_dim)

    outs = vgae_forward(params, x, adj, k_mask, mask_rate=0.2, alpha=1.0)
    outs = jax.block_until_ready(outs)
    z, mu, logvar, de_feat, q, feat_x, gnn_z, x_init, x_rec = outs

    num_mask = int(0.2 * N)
    assert z.shape == (N, latent_dim)
    assert mu.shape == (N, gcn_hidden2) and logvar.shape == (N, gcn_hidden2)
    assert de_feat.shape == (N, input_dim)
    assert q.shape == (N, dec_cluster_n)
    assert feat_x.shape == (N, feat_hidden2) and gnn_z.shape == (N, gcn_hidden2)
    assert x_init.shape == (num_mask, input_dim)
    assert x_rec.shape == (num_mask, input_dim)
    assert all(o.dtype == jnp.float32 for o in outs)
    assert bool(jnp.all(jnp.isfinite(q))) and bool(jnp.all(jnp.isfinite(z)))
    assert bool(jnp.all(jnp.abs(jnp.sum(q, axis=1) - 1.0) < 1e-3))

    # pure-JAX f32 reference check (kernel uses bf16 MXU operands -> loose tol)
    perm = jax.random.permutation(k_mask, N)
    mask_col = jnp.zeros((N, 1), jnp.float32).at[perm[:num_mask], 0].set(1.0)
    z_r, mu_r, lv_r, de_r, q_r, fx_r = ref_forward(params, x, adj, mask_col, 1.0)

    def maxdiff(a, b):
        return float(jnp.max(jnp.abs(a - b)))

    assert maxdiff(z, z_r) < 0.1, ("z", maxdiff(z, z_r))
    assert maxdiff(feat_x, fx_r) < 0.1, ("feat_x", maxdiff(feat_x, fx_r))
    assert maxdiff(logvar, lv_r) < 0.1, ("logvar", maxdiff(logvar, lv_r))
    assert maxdiff(de_feat, de_r) < 0.2, ("de_feat", maxdiff(de_feat, de_r))
    assert maxdiff(q, q_r) < 0.05, ("q", maxdiff(q, q_r))

    print("KERNEL_OK")
</pallas_src>

<mosaic_0001>
module attributes {stable_mosaic.version = 11 : i64} {
  func.func @_fused_vgae_kernel(%arg0: i32, %arg1: memref<64x40xbf16, #tpu.memory_space<vmem>>, %arg2: memref<10x128xf32, #tpu.memory_space<vmem>>, %arg3: memref<40x64xbf16, #tpu.memory_space<vmem>>, %arg4: memref<64x16xbf16, #tpu.memory_space<vmem>>, %arg5: memref<64x32xbf16, #tpu.memory_space<vmem>>, %arg6: memref<16x128xbf16, #tpu.memory_space<vmem>>, %arg7: memref<16x52xbf16, #tpu.memory_space<vmem>>, %arg8: memref<64x64xf32, #tpu.memory_space<any>>, %arg9: memref<64x128xf32, #tpu.memory_space<vmem>>, %arg10: memref<64x64xf32, #tpu.memory_space<vmem>>, %arg11: memref<1x!tpu.dma_semaphore, #tpu.memory_space<semaphore_mem>>) attributes {dimension_semantics = [#tpu.dimension_semantics<arbitrary>], iteration_bounds = array<i64: 1>, scalar_prefetch = 0 : i64, scratch_operands = 2 : i64, tpu.core_type = #tpu.core_type<tc>, window_params = [{pipeline_mode = #tpu.pipeline_mode<synchronous>, transform_indices = @transform_0, window_bounds = array<i64: 64, 40>}, {pipeline_mode = #tpu.pipeline_mode<synchronous>, transform_indices = @transform_1, window_bounds = array<i64: 10, 128>}, {pipeline_mode = #tpu.pipeline_mode<synchronous>, transform_indices = @transform_2, window_bounds = array<i64: 40, 64>}, {pipeline_mode = #tpu.pipeline_mode<synchronous>, transform_indices = @transform_3, window_bounds = array<i64: 64, 16>}, {pipeline_mode = #tpu.pipeline_mode<synchronous>, transform_indices = @transform_4, window_bounds = array<i64: 64, 32>}, {pipeline_mode = #tpu.pipeline_mode<synchronous>, transform_indices = @transform_5, window_bounds = array<i64: 16, 128>}, {pipeline_mode = #tpu.pipeline_mode<synchronous>, transform_indices = @transform_6, window_bounds = array<i64: 16, 52>}, {}, {pipeline_mode = #tpu.pipeline_mode<synchronous>, transform_indices = @transform_8, window_bounds = array<i64: 64, 128>}]} {
    %c0_i32 = arith.constant 0 : i32
    %0 = tpu.memref_slice %arg11[%c0_i32] : memref<1x!tpu.dma_semaphore, #tpu.memory_space<semaphore_mem>> -> memref<1x!tpu.dma_semaphore, #tpu.memory_space<semaphore_mem>>
    %1 = tpu.memref_squeeze %0 : memref<1x!tpu.dma_semaphore, #tpu.memory_space<semaphore_mem>> -> memref<!tpu.dma_semaphore, #tpu.memory_space<semaphore_mem>>
    tpu.enqueue_dma source(%arg8 : memref<64x64xf32, #tpu.memory_space<any>>) target(%arg10 : memref<64x64xf32, #tpu.memory_space<vmem>>) target_semaphore(%1 : memref<!tpu.dma_semaphore, #tpu.memory_space<semaphore_mem>>)
    %c0 = arith.constant 0 : index
    %c0_0 = arith.constant 0 : index
    %2 = vector.load %arg2[%c0, %c0_0] : memref<10x128xf32, #tpu.memory_space<vmem>>, vector<1x64xf32>
    %c1 = arith.constant 1 : index
    %c0_1 = arith.constant 0 : index
    %3 = vector.load %arg2[%c1, %c0_1] : memref<10x128xf32, #tpu.memory_space<vmem>>, vector<1x64xf32>
    %c2 = arith.constant 2 : index
    %c0_2 = arith.constant 0 : index
    %4 = vector.load %arg2[%c2, %c0_2] : memref<10x128xf32, #tpu.memory_space<vmem>>, vector<1x16xf32>
    %c3 = arith.constant 3 : index
    %c0_3 = arith.constant 0 : index
    %5 = vector.load %arg2[%c3, %c0_3] : memref<10x128xf32, #tpu.memory_space<vmem>>, vector<1x16xf32>
    %c4 = arith.constant 4 : index
    %c0_4 = arith.constant 0 : index
    %6 = vector.load %arg2[%c4, %c0_4] : memref<10x128xf32, #tpu.memory_space<vmem>>, vector<1x64xf32>
    %c5 = arith.constant 5 : index
    %c0_5 = arith.constant 0 : index
    %7 = vector.load %arg2[%c5, %c0_5] : memref<10x128xf32, #tpu.memory_space<vmem>>, vector<1x64xf32>
    %c6 = arith.constant 6 : index
    %c0_6 = arith.constant 0 : index
    %8 = vector.load %arg2[%c6, %c0_6] : memref<10x128xf32, #tpu.memory_space<vmem>>, vector<1x32xf32>
    %c7 = arith.constant 7 : index
    %c0_7 = arith.constant 0 : index
    %9 = vector.load %arg2[%c7, %c0_7] : memref<10x128xf32, #tpu.memory_space<vmem>>, vector<1x32xf32>
    %c8 = arith.constant 8 : index
    %c0_8 = arith.constant 0 : index
    %10 = vector.load %arg2[%c8, %c0_8] : memref<10x128xf32, #tpu.memory_space<vmem>>, vector<1x32xf32>
    %c9 = arith.constant 9 : index
    %c0_9 = arith.constant 0 : index
    %11 = vector.load %arg2[%c9, %c0_9] : memref<10x128xf32, #tpu.memory_space<vmem>>, vector<1x20xf32>
    %c0_10 = arith.constant 0 : index
    %c0_11 = arith.constant 0 : index
    %12 = vector.load %arg1[%c0_10, %c0_11] : memref<64x40xbf16, #tpu.memory_space<vmem>>, vector<64x40xbf16>
    %c0_12 = arith.constant 0 : index
    %c0_13 = arith.constant 0 : index
    %13 = vector.load %arg3[%c0_12, %c0_13] : memref<40x64xbf16, #tpu.memory_space<vmem>>, vector<40x64xbf16>
    %cst = arith.constant dense<0.000000e+00> : vector<64x64xf32>
    %14 = tpu.matmul %12, %13, %cst {dimension_numbers = #tpu.dot_dimension_numbers<[1], [0], [0], [1], [0, 0, 1, 1], [], []>} : vector<64x40xbf16>, vector<40x64xbf16>, vector<64x64xf32> -> vector<64x64xf32>
    %15 = vector.broadcast %2 : vector<1x64xf32> to vector<64x64xf32>
    %16 = arith.mulf %14, %15 : vector<64x64xf32>
    %17 = vector.broadcast %3 : vector<1x64xf32> to vector<64x64xf32>
    %18 = arith.addf %16, %17 : vector<64x64xf32>
    %cst_14 = arith.constant 0.000000e+00 : f32
    %19 = vector.broadcast %cst_14 : f32 to vector<64x64xf32>
    %20 = arith.maximumf %18, %19 : vector<64x64xf32>
    %21 = arith.truncf %20 : vector<64x64xf32> to vector<64x64xbf16>
    %c0_15 = arith.constant 0 : index
    %c0_16 = arith.constant 0 : index
    %22 = vector.load %arg4[%c0_15, %c0_16] : memref<64x16xbf16, #tpu.memory_space<vmem>>, vector<64x16xbf16>
    %cst_17 = arith.constant dense<0.000000e+00> : vector<64x16xf32>
    %23 = tpu.matmul %21, %22, %cst_17 {dimension_numbers = #tpu.dot_dimension_numbers<[1], [0], [0], [1], [0, 0, 1, 1], [], []>} : vector<64x64xbf16>, vector<64x16xbf16>, vector<64x16xf32> -> vector<64x16xf32>
    %24 = vector.broadcast %4 : vector<1x16xf32> to vector<64x16xf32>
    %25 = arith.mulf %23, %24 : vector<64x16xf32>
    %26 = vector.broadcast %5 : vector<1x16xf32> to vector<64x16xf32>
    %27 = arith.addf %25, %26 : vector<64x16xf32>
    %cst_18 = arith.constant 0.000000e+00 : f32
    %28 = vector.broadcast %cst_18 : f32 to vector<64x16xf32>
    %29 = arith.maximumf %27, %28 : vector<64x16xf32>
    %30 = arith.truncf %29 : vector<64x16xf32> to vector<64x16xbf16>
    %c0_19 = arith.constant 0 : index
    %c0_20 = arith.constant 0 : index
    %31 = vector.load %arg6[%c0_19, %c0_20] : memref<16x128xbf16, #tpu.memory_space<vmem>>, vector<16x128xbf16>
    %cst_21 = arith.constant dense<0.000000e+00> : vector<64x128xf32>
    %32 = tpu.matmul %30, %31, %cst_21 {dimension_numbers = #tpu.dot_dimension_numbers<[1], [0], [0], [1], [0, 0, 1, 1], [], []>} : vector<64x16xbf16>, vector<16x128xbf16>, vector<64x128xf32> -> vector<64x128xf32>
    %c0_i32_22 = arith.constant 0 : i32
    %33 = tpu.memref_slice %arg11[%c0_i32_22] : memref<1x!tpu.dma_semaphore, #tpu.memory_space<semaphore_mem>> -> memref<1x!tpu.dma_semaphore, #tpu.memory_space<semaphore_mem>>
    %34 = tpu.memref_squeeze %33 : memref<1x!tpu.dma_semaphore, #tpu.memory_space<semaphore_mem>> -> memref<!tpu.dma_semaphore, #tpu.memory_space<semaphore_mem>>
    tpu.wait_dma2 semaphore(%34 : memref<!tpu.dma_semaphore, #tpu.memory_space<semaphore_mem>>) src(%arg8 : memref<64x64xf32, #tpu.memory_space<any>>) dst(%arg10 : memref<64x64xf32, #tpu.memory_space<vmem>>)
    %c0_23 = arith.constant 0 : index
    %c0_24 = arith.constant 0 : index
    %35 = vector.load %arg10[%c0_23, %c0_24] : memref<64x64xf32, #tpu.memory_space<vmem>>, vector<64x64xf32>
    %cst_25 = arith.constant dense<0.000000e+00> : vector<64xf32>
    %36 = vector.multi_reduction <add>, %35, %cst_25 [1] : vector<64x64xf32> to vector<64xf32>
    %37 = vector.shape_cast %36 : vector<64xf32> to vector<64x1xf32>
    %cst_26 = arith.constant 1.000000e+00 : f32
    %38 = vector.broadcast %cst_26 : f32 to vector<64x1xf32>
    %39 = arith.addf %37, %38 : vector<64x1xf32>
    %40 = math.rsqrt %39 : vector<64x1xf32>
    %41 = arith.mulf %40, %40 : vector<64x1xf32>
    %42 = arith.truncf %35 : vector<64x64xf32> to vector<64x64xbf16>
    %43 = vector.extract_strided_slice %32 {offsets = [0, 0], sizes = [64, 64], strides = [1, 1]} : vector<64x128xf32> to vector<64x64xf32>
    %44 = vector.broadcast %40 : vector<64x1xf32> to vector<64x64xf32>
    %45 = arith.mulf %44, %43 : vector<64x64xf32>
    %46 = arith.truncf %45 : vector<64x64xf32> to vector<64x64xbf16>
    %cst_27 = arith.constant dense<0.000000e+00> : vector<64x64xf32>
    %47 = tpu.matmul %42, %46, %cst_27 {dimension_numbers = #tpu.dot_dimension_numbers<[1], [0], [0], [1], [0, 0, 1, 1], [], []>} : vector<64x64xbf16>, vector<64x64xbf16>, vector<64x64xf32> -> vector<64x64xf32>
    %48 = vector.broadcast %40 : vector<64x1xf32> to vector<64x64xf32>
    %49 = arith.mulf %48, %47 : vector<64x64xf32>
    %50 = vector.broadcast %41 : vector<64x1xf32> to vector<64x64xf32>
    %51 = arith.mulf %50, %43 : vector<64x64xf32>
    %52 = arith.addf %49, %51 : vector<64x64xf32>
    %53 = vector.broadcast %6 : vector<1x64xf32> to vector<64x64xf32>
    %54 = arith.mulf %52, %53 : vector<64x64xf32>
    %55 = vector.broadcast %7 : vector<1x64xf32> to vector<64x64xf32>
    %56 = arith.addf %54, %55 : vector<64x64xf32>
    %cst_28 = arith.constant 0.000000e+00 : f32
    %57 = vector.broadcast %cst_28 : f32 to vector<64x64xf32>
    %58 = arith.maximumf %56, %57 : vector<64x64xf32>
    %59 = arith.truncf %58 : vector<64x64xf32> to vector<64x64xbf16>
    %c0_29 = arith.constant 0 : index
    %c0_30 = arith.constant 0 : index
    %60 = vector.load %arg5[%c0_29, %c0_30] : memref<64x32xbf16, #tpu.memory_space<vmem>>, vector<64x32xbf16>
    %cst_31 = arith.constant dense<0.000000e+00> : vector<64x32xf32>
    %61 = tpu.matmul %59, %60, %cst_31 {dimension_numbers = #tpu.dot_dimension_numbers<[1], [0], [0], [1], [0, 0, 1, 1], [], []>} : vector<64x64xbf16>, vector<64x32xbf16>, vector<64x32xf32> -> vector<64x32xf32>
    %62 = vector.broadcast %40 : vector<64x1xf32> to vector<64x32xf32>
    %63 = arith.mulf %62, %61 : vector<64x32xf32>
    %64 = arith.truncf %63 : vector<64x32xf32> to vector<64x32xbf16>
    %cst_32 = arith.constant dense<0.000000e+00> : vector<64x32xf32>
    %65 = tpu.matmul %42, %64, %cst_32 {dimension_numbers = #tpu.dot_dimension_numbers<[1], [0], [0], [1], [0, 0, 1, 1], [], []>} : vector<64x64xbf16>, vector<64x32xbf16>, vector<64x32xf32> -> vector<64x32xf32>
    %66 = vector.broadcast %40 : vector<64x1xf32> to vector<64x32xf32>
    %67 = arith.mulf %66, %65 : vector<64x32xf32>
    %68 = vector.broadcast %41 : vector<64x1xf32> to vector<64x32xf32>
    %69 = arith.mulf %68, %61 : vector<64x32xf32>
    %70 = arith.addf %67, %69 : vector<64x32xf32>
    %71 = vector.broadcast %8 : vector<1x32xf32> to vector<64x32xf32>
    %72 = arith.mulf %70, %71 : vector<64x32xf32>
    %73 = vector.broadcast %9 : vector<1x32xf32> to vector<64x32xf32>
    %74 = arith.addf %72, %73 : vector<64x32xf32>
    %cst_33 = arith.constant 0.000000e+00 : f32
    %75 = vector.broadcast %cst_33 : f32 to vector<64x32xf32>
    %76 = arith.maximumf %74, %75 : vector<64x32xf32>
    %77 = vector.extract_strided_slice %76 {offsets = [0, 0], sizes = [64, 16], strides = [1, 1]} : vector<64x32xf32> to vector<64x16xf32>
    %78 = vector.extract_strided_slice %76 {offsets = [0, 16], sizes = [64, 16], strides = [1, 1]} : vector<64x32xf32> to vector<64x16xf32>
    %79 = arith.truncf %77 : vector<64x16xf32> to vector<64x16xbf16>
    %c0_34 = arith.constant 0 : index
    %c0_35 = arith.constant 0 : index
    %80 = vector.load %arg7[%c0_34, %c0_35] : memref<16x52xbf16, #tpu.memory_space<vmem>>, vector<16x52xbf16>
    %cst_36 = arith.constant dense<0.000000e+00> : vector<64x52xf32>
    %81 = tpu.matmul %79, %80, %cst_36 {dimension_numbers = #tpu.dot_dimension_numbers<[1], [0], [0], [1], [0, 0, 1, 1], [], []>} : vector<64x16xbf16>, vector<16x52xbf16>, vector<64x52xf32> -> vector<64x52xf32>
    %82 = vector.extract_strided_slice %32 {offsets = [0, 64], sizes = [64, 32], strides = [1, 1]} : vector<64x128xf32> to vector<64x32xf32>
    %83 = vector.extract_strided_slice %81 {offsets = [0, 0], sizes = [64, 32], strides = [1, 1]} : vector<64x52xf32> to vector<64x32xf32>
    %84 = arith.addf %82, %83 : vector<64x32xf32>
    %85 = vector.broadcast %40 : vector<64x1xf32> to vector<64x32xf32>
    %86 = arith.mulf %85, %84 : vector<64x32xf32>
    %87 = arith.truncf %86 : vector<64x32xf32> to vector<64x32xbf16>
    %cst_37 = arith.constant dense<0.000000e+00> : vector<64x32xf32>
    %88 = tpu.matmul %42, %87, %cst_37 {dimension_numbers = #tpu.dot_dimension_numbers<[1], [0], [0], [1], [0, 0, 1, 1], [], []>} : vector<64x64xbf16>, vector<64x32xbf16>, vector<64x32xf32> -> vector<64x32xf32>
    %89 = vector.broadcast %40 : vector<64x1xf32> to vector<64x32xf32>
    %90 = arith.mulf %89, %88 : vector<64x32xf32>
    %91 = vector.broadcast %41 : vector<64x1xf32> to vector<64x32xf32>
    %92 = arith.mulf %91, %84 : vector<64x32xf32>
    %93 = arith.addf %90, %92 : vector<64x32xf32>
    %94 = vector.broadcast %10 : vector<1x32xf32> to vector<64x32xf32>
    %95 = arith.addf %93, %94 : vector<64x32xf32>
    %96 = vector.extract_strided_slice %32 {offsets = [0, 96], sizes = [64, 20], strides = [1, 1]} : vector<64x128xf32> to vector<64x20xf32>
    %97 = vector.extract_strided_slice %81 {offsets = [0, 32], sizes = [64, 20], strides = [1, 1]} : vector<64x52xf32> to vector<64x20xf32>
    %98 = arith.addf %96, %97 : vector<64x20xf32>
    %99 = arith.mulf %29, %29 : vector<64x16xf32>
    %cst_38 = arith.constant dense<0.000000e+00> : vector<64xf32>
    %100 = vector.multi_reduction <add>, %99, %cst_38 [1] : vector<64x16xf32> to vector<64xf32>
    %101 = vector.shape_cast %100 : vector<64xf32> to vector<64x1xf32>
    %102 = arith.mulf %77, %77 : vector<64x16xf32>
    %cst_39 = arith.constant dense<0.000000e+00> : vector<64xf32>
    %103 = vector.multi_reduction <add>, %102, %cst_39 [1] : vector<64x16xf32> to vector<64xf32>
    %104 = vector.shape_cast %103 : vector<64xf32> to vector<64x1xf32>
    %105 = arith.addf %101, %104 : vector<64x1xf32>
    %cst_40 = arith.constant 2.000000e+00 : f32
    %106 = vector.broadcast %cst_40 : f32 to vector<64x20xf32>
    %107 = arith.mulf %106, %98 : vector<64x20xf32>
    %108 = vector.broadcast %105 : vector<64x1xf32> to vector<64x20xf32>
    %109 = arith.subf %108, %107 : vector<64x20xf32>
    %110 = vector.broadcast %11 : vector<1x20xf32> to vector<64x20xf32>
    %111 = arith.addf %109, %110 : vector<64x20xf32>
    %cst_41 = arith.constant 0.000000e+00 : f32
    %112 = vector.broadcast %cst_41 : f32 to vector<64x20xf32>
    %113 = arith.maximumf %111, %112 : vector<64x20xf32>
    %cst_42 = arith.constant 1.000000e+00 : f32
    %114 = vector.broadcast %cst_42 : f32 to vector<64x20xf32>
    %115 = arith.mulf %113, %114 : vector<64x20xf32>
    %cst_43 = arith.constant 1.000000e+00 : f32
    %116 = vector.broadcast %cst_43 : f32 to vector<64x20xf32>
    %117 = arith.addf %116, %115 : vector<64x20xf32>
    %cst_44 = arith.constant 9.99999993E-9 : f32
    %118 = vector.broadcast %cst_44 : f32 to vector<64x20xf32>
    %119 = arith.addf %117, %118 : vector<64x20xf32>
    %120 = tpu.reciprocal %119 {approx = true} : vector<64x20xf32> -> vector<64x20xf32>
    %cst_45 = arith.constant dense<0.000000e+00> : vector<64xf32>
    %121 = vector.multi_reduction <add>, %120, %cst_45 [1] : vector<64x20xf32> to vector<64xf32>
    %122 = vector.shape_cast %121 : vector<64xf32> to vector<64x1xf32>
    %123 = vector.broadcast %122 : vector<64x1xf32> to vector<64x20xf32>
    %124 = arith.divf %120, %123 : vector<64x20xf32>
    %cst_46 = arith.constant 0.000000e+00 : f32
    %125 = vector.broadcast %cst_46 : f32 to vector<64x128xf32>
    %c0_47 = arith.constant 0 : index
    %c0_48 = arith.constant 0 : index
    %126 = vector.load %arg9[%c0_47, %c0_48] : memref<64x128xf32, #tpu.memory_space<vmem>>, vector<64x128xf32>
    tpu.vector_store %arg9[%c0_47, %c0_48], %125 {strides = array<i32>} : memref<64x128xf32, #tpu.memory_space<vmem>>, vector<64x128xf32>,
    %c0_49 = arith.constant 0 : index
    %c0_50 = arith.constant 0 : index
    %127 = vector.load %arg9[%c0_49, %c0_50] : memref<64x128xf32, #tpu.memory_space<vmem>>, vector<64x16xf32>
    tpu.vector_store %arg9[%c0_49, %c0_50], %29 {strides = array<i32>} : memref<64x128xf32, #tpu.memory_space<vmem>>, vector<64x16xf32>,
    %c0_51 = arith.constant 0 : index
    %c16 = arith.constant 16 : index
    %128 = vector.load %arg9[%c0_51, %c16] : memref<64x128xf32, #tpu.memory_space<vmem>>, vector<64x16xf32>
    tpu.vector_store %arg9[%c0_51, %c16], %77 {strides = array<i32>} : memref<64x128xf32, #tpu.memory_space<vmem>>, vector<64x16xf32>,
    %c0_52 = arith.constant 0 : index
    %c32 = arith.constant 32 : index
    %129 = vector.load %arg9[%c0_52, %c32] : memref<64x128xf32, #tpu.memory_space<vmem>>, vector<64x16xf32>
    tpu.vector_store %arg9[%c0_52, %c32], %78 {strides = array<i32>} : memref<64x128xf32, #tpu.memory_space<vmem>>, vector<64x16xf32>,
    %c0_53 = arith.constant 0 : index
    %c48 = arith.constant 48 : index
    %130 = vector.load %arg9[%c0_53, %c48] : memref<64x128xf32, #tpu.memory_space<vmem>>, vector<64x32xf32>
    tpu.vector_store %arg9[%c0_53, %c48], %95 {strides = array<i32>} : memref<64x128xf32, #tpu.memory_space<vmem>>, vector<64x32xf32>,
    %c0_54 = arith.constant 0 : index
    %c80 = arith.constant 80 : index
    %131 = vector.load %arg9[%c0_54, %c80] : memref<64x128xf32, #tpu.memory_space<vmem>>, vector<64x20xf32>
    tpu.vector_store %arg9[%c0_54, %c80], %124 {strides = array<i32>} : memref<64x128xf32, #tpu.memory_space<vmem>>, vector<64x20xf32>,
    return
  }
  func.func @transform_0(%arg0: i32) -> (i32, i32) {
    %c0_i32 = arith.constant 0 : i32
    %c0_i32_0 = arith.constant 0 : i32
    %c0_i32_1 = arith.constant 0 : i32
    return %c0_i32, %c0_i32_0 : i32, i32
  }
  func.func @transform_1(%arg0: i32) -> (i32, i32) {
    %c0_i32 = arith.constant 0 : i32
    %c0_i32_0 = arith.constant 0 : i32
    %c0_i32_1 = arith.constant 0 : i32
    return %c0_i32, %c0_i32_0 : i32, i32
  }
  func.func @transform_2(%arg0: i32) -> (i32, i32) {
    %c0_i32 = arith.constant 0 : i32
    %c0_i32_0 = arith.constant 0 : i32
    %c0_i32_1 = arith.constant 0 : i32
    return %c0_i32, %c0_i32_0 : i32, i32
  }
  func.func @transform_3(%arg0: i32) -> (i32, i32) {
    %c0_i32 = arith.constant 0 : i32
    %c0_i32_0 = arith.constant 0 : i32
    %c0_i32_1 = arith.constant 0 : i32
    return %c0_i32, %c0_i32_0 : i32, i32
  }
  func.func @transform_4(%arg0: i32) -> (i32, i32) {
    %c0_i32 = arith.constant 0 : i32
    %c0_i32_0 = arith.constant 0 : i32
    %c0_i32_1 = arith.constant 0 : i32
    return %c0_i32, %c0_i32_0 : i32, i32
  }
  func.func @transform_5(%arg0: i32) -> (i32, i32) {
    %c0_i32 = arith.constant 0 : i32
    %c0_i32_0 = arith.constant 0 : i32
    %c0_i32_1 = arith.constant 0 : i32
    return %c0_i32, %c0_i32_0 : i32, i32
  }
  func.func @transform_6(%arg0: i32) -> (i32, i32) {
    %c0_i32 = arith.constant 0 : i32
    %c0_i32_0 = arith.constant 0 : i32
    %c0_i32_1 = arith.constant 0 : i32
    return %c0_i32, %c0_i32_0 : i32, i32
  }
  func.func @transform_8(%arg0: i32) -> (i32, i32) {
    %c0_i32 = arith.constant 0 : i32
    %c0_i32_0 = arith.constant 0 : i32
    %c0_i32_1 = arith.constant 0 : i32
    return %c0_i32, %c0_i32_0 : i32, i32
  }
}

</mosaic_0001>

<bundles_post_ra>
// kernel: tpu_custom_call.1
= control target key start
LH: loop header
LB: loop body
LE: loop exit
PB: predicated region body
PF: predicated region fallthrough
CT: control target
= control target key end

     0   :  { %13 = vsyncpa [#allocation5], 0  ;;  %s2710_s0 = inlined_call_operand.vmem [shape: bf16[64,40], index: 0, kind: input, shape index: {}]   ;;  %s2711_s1 = inlined_call_operand.vmem [shape: f32[10,128], index: 1, kind: input, shape index: {}]   ;;  %s2712_s2 = inlined_call_operand.vmem [shape: bf16[40,64], index: 2, kind: input, shape index: {}]   ;;  %s2713_s3 = inlined_call_operand.vmem [shape: bf16[64,16], index: 3, kind: input, shape index: {}]   ;;  %s2714_s4 = inlined_call_operand.vmem [shape: bf16[64,32], index: 4, kind: input, shape index: {}]   ;;  %s2715_s5 = inlined_call_operand.vmem [shape: bf16[16,128], index: 5, kind: input, shape index: {}]   ;;  %s2716_s6 = inlined_call_operand.vmem [shape: bf16[16,52], index: 6, kind: input, shape index: {}]   ;;  %s2717_s7 = inlined_call_operand.vmem [shape: f32[64,64], index: 7, kind: input, shape index: {}]   ;;  %s2718_s8 = inlined_call_operand.hbm [shape: f32[64,128], index: 8, kind: output, shape index: {}]  }
   0x1   :  { %v2014_v0 = vld [vmem:[%s2717_s7] sm:$0xff]  ;;  %v2019_v1 = vld [vmem:[%s2717_s7 + $0x8] sm:$0xff]  ;;  %v2024_v2 = vld [vmem:[%s2717_s7 + $0x10] sm:$0xff] }
   0x2   :  { %v2029_v3 = vld [vmem:[%s2717_s7 + $0x18] sm:$0xff]  ;;  %v2034_v4 = vld [vmem:[%s2717_s7 + $0x20] sm:$0xff]  ;;  %v2039_v5 = vld [vmem:[%s2717_s7 + $0x28] sm:$0xff] }
   0x3   :  { %v2044_v6 = vld [vmem:[%s2717_s7 + $0x30] sm:$0xff]  ;;  %v2049_v7 = vld [vmem:[%s2717_s7 + $0x38] sm:$0xff] }
   0x4   :  { %85 = vsyncadd [#allocation3], 1024  ;;  %v2054_v8 = vld [vmem:[%s2711_s1 + $0x4] ss:$0 sm:$0xff]  ;;  %v2059_v9 = vld [vmem:[%s2711_s1 + $0x5] ss:$0 sm:$0xff] }
   0x5   :  { %v2064_v10 = vld [vmem:[%s2711_s1 + $0x6] ss:$0 sm:$0xff]  ;;  %v2069_v11 = vld [vmem:[%s2711_s1 + $0x7] ss:$0 sm:$0xff]  ;;  %v2074_v12 = vld [vmem:[%s2711_s1 + $0x8] ss:$0 sm:$0xff] }
   0x6   :  { %2730 = vst [vmem:[#allocation9_spill] sm:$0xff] %v2074_v12  ;;  %v2079_v13 = vld [vmem:[%s2711_s1 + $0x9] ss:$0 sm:$0xff]  ;;  %v1867_v14 = vld [vmem:[%s2712_s2 + $0x10] ss:$0 sps:$4 sm:$0xff]   ;;  %vm157_vm0 = vcmask 1043456  }
   0x7   :  { %2731 = vst [vmem:[#allocation10_spill] sm:$0xff] %v2079_v13  ;;  %v1868_v15 = vld [vmem:[%s2712_s2 + $0x8] sm:$0xff]   ;;  %1856 = vmatprep.subr.msk.bf16.mxu0 %vm157_vm0, %v1867_v14  ;;  %v159_v16 = vsel %vm157_vm0, %v1867_v14, 0  ;;  %v1870_v17 = vld [vmem:[%s2710_s0] sm:$0xff]   ;;  %vm144_vm1 = vcmask 326656   ;;  %v1872_v20 = vld [vmem:[%s2710_s0 + $0x10] sm:$0xff]  }
   0x8   :  { %1743 = vmatpush3.bf16.msra.mxu0 %v159_v16  ;;  %v1869_v18 = vld [vmem:[%s2712_s2] sm:$0xff]   ;;  %1748 = vmatprep.mubr.msk.bf16.mxu0 %vm144_vm1, %v1870_v17  ;;  %v1871_v19 = vld [vmem:[%s2710_s0 + $0x8] sm:$0xff]   ;;  %v1873_v21 = vld [vmem:[%s2710_s0 + $0x18] sm:$0xff]   ;;  %vm294_vm2 = vcmask 523264   ;;  %vm416_vm3 = vcmask 130048  }
   0x9   :  { %1744 = vmatprep.subr.bf16.mxu0 %v1868_v15  ;;  %v1874_v22 = vld [vmem:[%s2713_s3 + $0x18] sm:$0xff]   ;;  %v1875_v23 = vld [vmem:[%s2713_s3 + $0x10] sm:$0xff]   ;;  %v1876_v24 = vld [vmem:[%s2713_s3 + $0x8] sm:$0xff]  }
   0xa   :  { %1756 = vmatprep.subr.bf16.mxu1 %v1874_v22  ;;  %v1877_v25 = vld [vmem:[%s2713_s3] sm:$0xff]  }
   0xb   :  { %1757 = vmatpush3.bf16.msra.mxu1 %v1874_v22  ;;  %v1878_v26 = vld [vmem:[%s2715_s5] sm:$0xff]  }
   0xc   :  { %1745 = vmatpush3.bf16.msra.mxu0 %v1868_v15  ;;  %1758 = vmatprep.subr.bf16.mxu1 %v1875_v23  ;;  %v1636_v28 = vld [vmem:[%s2711_s1] ss:$0 sm:$0xff]  ;;  %v1637_v33 = vld [vmem:[%s2711_s1 + $0x1] ss:$0 sm:$0xff]  ;;  %v1646_v16 = vld [vmem:[%s2711_s1 + $0x2] ss:$0 sm:$0xff] }
   0xd   :  { %1746 = vmatprep.subr.bf16.mxu0 %v1869_v18 }
   0xf   :  { %1759 = vmatpush3.bf16.msra.mxu1 %v1875_v23 }
  0x10   :  { %1747 = vmatpush3.bf16.msra.mxu0 %v1869_v18  ;;  %1760 = vmatprep.subr.bf16.mxu1 %v1876_v24 }
  0x11   :  { %1772 = vmatprep.subr.bf16.mxu0 %v1878_v26 }
  0x13   :  { %1749 = vmatmul.mubr.msk.bf16.vlgmr.msra.gmra.mxu0 %vm144_vm1, %v1871_v19  ;;  %1761 = vmatpush3.bf16.msra.mxu1 %v1876_v24 }
  0x14   :  { %1752 = vmatprep.mubr.msk.bf16.mxu0 %vm144_vm1, %v1872_v20  ;;  %1762 = vmatprep.subr.bf16.mxu1 %v1877_v25 }
  0x15   :  { %1773 = vmatpush3.bf16.msra.mxu0 %v1878_v26 }
  0x17   :  { %1763 = vmatpush3.bf16.msra.mxu1 %v1877_v25 }
  0x1b   :  { %1753 = vmatmul.mubr.msk.bf16.gmra.mxu0 %vm144_vm1, %v1873_v21  ;;  %v1647_v21 = vld [vmem:[%s2711_s1 + $0x3] ss:$0 sm:$0xff] }
  0xd3   :  { %v1750_v27 = vpop.f32.mrf.mxu0 }
  0xd4   :  { %v232_v31 = vmul.f32 %v1750_v27, %v1636_v28 }
  0xd5   :  { %v195_v29 = vpop.f32.mrf.mxu0 }
  0xd6   :  { %v230_v30 = vmul.f32 %v1636_v28, %v195_v29  ;;  %v244_v39 = vadd.f32 %v1637_v33, %v232_v31 }
  0xd7   :  { %v1751_v32 = vpop.f32.mrf.mxu0 }
  0xd8   :  { %v233_v34 = vmul.f32 %v1751_v32, %v1636_v28  ;;  %v242_v36 = vadd.f32 %v1637_v33, %v230_v30  ;;  %v252_v47 = vmax.f32 %v244_v39, 0.0 }
  0xd9   :  { %v198_v35 = vpop.f32.mrf.mxu0 }
  0xda   :  { %v245_v37 = vadd.f32 %v1637_v33, %v233_v34  ;;  %v231_v38 = vmul.f32 %v1636_v28, %v198_v35  ;;  %v250_v44 = vmax.f32 %v242_v36, 0.0 }
  0xdb   :  { %v1754_v40 = vpop.f32.mrf.mxu0 }
  0xdc   :  { %v243_v41 = vadd.f32 %v1637_v33, %v231_v38  ;;  %v253_v42 = vmax.f32 %v245_v37, 0.0  ;;  %v236_v48 = vmul.f32 %v1754_v40, %v1636_v28 }
  0xdd   :  { %v211_v43 = vpop.f32.mrf.mxu0 }
  0xde   :  { %v251_v45 = vmax.f32 %v243_v41, 0.0  ;;  %v234_v46 = vmul.f32 %v1636_v28, %v211_v43  ;;  %v259_v52 = vpack.c.bf16 %v253_v42, %v252_v47  ;;  %v248_v57 = vadd.f32 %v1637_v33, %v236_v48 }
  0xdf   :  { %v1755_v49 = vpop.f32.mrf.mxu0 }
  0xe0   :  { %v237_v50 = vmul.f32 %v1755_v49, %v1636_v28  ;;  %v258_v51 = vpack.c.bf16 %v251_v45, %v250_v44  ;;  %v246_v54 = vadd.f32 %v1637_v33, %v234_v46  ;;  %v256_v62 = vmax.f32 %v248_v57, 0.0 }
  0xe1   :  { %v214_v53 = vpop.f32.mrf.mxu0 }
  0xe2   :  { %v249_v55 = vadd.f32 %v1637_v33, %v237_v50  ;;  %v235_v56 = vmul.f32 %v1636_v28, %v214_v53  ;;  %1764 = vmatprep.mubr.msk.bf16.mxu1 %vm294_vm2, %v258_v51  ;;  %v254_v60 = vmax.f32 %v246_v54, 0.0 }
  0xe3   :  { %1765 = vmatmul.mubr.msk.bf16.vlgmr.msra.gmra.mxu1 %vm294_vm2, %v259_v52 }
  0xe4   :  { %v247_v58 = vadd.f32 %v1637_v33, %v235_v56  ;;  %v257_v59 = vmax.f32 %v249_v55, 0.0 }
  0xe6   :  { %v255_v61 = vmax.f32 %v247_v58, 0.0  ;;  %v261_v14 = vpack.c.bf16 %v257_v59, %v256_v62  ;;  %v517_v62 = vsel %vm294_vm2, %v2034_v4, 0.0 }
  0xe8   :  { %v260_v63 = vpack.c.bf16 %v255_v61, %v254_v60  ;;  %v523_v61 = vsel %vm294_vm2, %v2044_v6, 0.0 }
  0xea   :  { %1768 = vmatprep.mubr.msk.bf16.mxu1 %vm294_vm2, %v260_v63 }
  0xeb   :  { %1769 = vmatmul.mubr.msk.bf16.gmra.mxu1 %vm294_vm2, %v261_v14 }
 0x1a3   :  { %v1766_v15 = vpop.f32.mrf.mxu1 }
 0x1a4   :  { %v378_v19 = vmul.f32 %v1766_v15, %v1646_v16 }
 0x1a5   :  { %v341_v17 = vpop.f32.mrf.mxu1 }
 0x1a6   :  { %v376_v18 = vmul.f32 %v1646_v16, %v341_v17  ;;  %v390_v27 = vadd.f32 %v1647_v21, %v378_v19 }
 0x1a7   :  { %v1767_v20 = vpop.f32.mrf.mxu1 }
 0x1a8   :  { %v379_v22 = vmul.f32 %v1767_v20, %v1646_v16  ;;  %v388_v24 = vadd.f32 %v1647_v21, %v376_v18  ;;  %v2139_v35 = vmax.f32 %v390_v27, 0.0 }
 0x1a9   :  { %v344_v23 = vpop.f32.mrf.mxu1 }
 0x1aa   :  { %v391_v25 = vadd.f32 %v1647_v21, %v379_v22  ;;  %v377_v26 = vmul.f32 %v1646_v16, %v344_v23  ;;  %v2135_v32 = vmax.f32 %v388_v24, 0.0 }
 0x1ab   :  { %v1770_v28 = vpop.f32.mrf.mxu1 }
 0x1ac   :  { %v389_v29 = vadd.f32 %v1647_v21, %v377_v26  ;;  %v2133_v30 = vmax.f32 %v391_v25, 0.0  ;;  %v382_v36 = vmul.f32 %v1770_v28, %v1646_v16 }
 0x1ad   :  { %v357_v31 = vpop.f32.mrf.mxu1 }
 0x1ae   :  { %v2137_v33 = vmax.f32 %v389_v29, 0.0  ;;  %v380_v34 = vmul.f32 %v1646_v16, %v357_v31  ;;  %v405_v40 = vpack.c.bf16 %v2133_v30, %v2139_v35  ;;  %v394_v45 = vadd.f32 %v1647_v21, %v382_v36 }
 0x1af   :  { %v1771_v37 = vpop.f32.mrf.mxu1 }
 0x1b0   :  { %v404_v38 = vpack.c.bf16 %v2137_v33, %v2135_v32  ;;  %v383_v39 = vmul.f32 %v1771_v37, %v1646_v16  ;;  %v392_v42 = vadd.f32 %v1647_v21, %v380_v34  ;;  %v2153_v50 = vmax.f32 %v394_v45, 0.0 }
 0x1b1   :  { %v360_v41 = vpop.f32.mrf.mxu1 }
 0x1b2   :  { %v395_v43 = vadd.f32 %v1647_v21, %v383_v39  ;;  %v381_v44 = vmul.f32 %v1646_v16, %v360_v41  ;;  %1774 = vmatprep.mubr.msk.bf16.mxu0 %vm416_vm3, %v404_v38  ;;  %v2149_v48 = vmax.f32 %v392_v42, 0.0 }
 0x1b3   :  { %1775 = vmatmul.mubr.msk.bf16.vlgmr.msra.gmra.mxu0 %vm416_vm3, %v405_v40 }
 0x1b4   :  { %v393_v46 = vadd.f32 %v1647_v21, %v381_v44  ;;  %v2147_v47 = vmax.f32 %v395_v43, 0.0 }
 0x1b6   :  { %v2151_v49 = vmax.f32 %v393_v46, 0.0  ;;  %v407_v52 = vpack.c.bf16 %v2147_v47, %v2153_v50 }
 0x1b8   :  { %v406_v51 = vpack.c.bf16 %v2151_v49, %v2149_v48 }
 0x1ba   :  { %1778 = vmatprep.mubr.msk.bf16.mxu0 %vm416_vm3, %v406_v51 }
 0x1bb   :  { %1779 = vmatmul.mubr.msk.bf16.gmra.mxu0 %vm416_vm3, %v407_v52 }
 0x273   :  { %v2161_v53 = vpop.f32.mrf.mxu0 }
 0x275   :  { %v2163_v54 = vpop.f32.mrf.mxu0 }
 0x277   :  { %v2165_v55 = vpop.f32.mrf.mxu0 }
 0x279   :  { %v2167_v56 = vpop.f32.mrf.mxu0 }
 0x27b   :  { %v2169_v57 = vpop.f32.mrf.mxu0 }
 0x27d   :  { %v2171_v58 = vpop.f32.mrf.mxu0 }
 0x27f   :  { %v2173_v59 = vpop.f32.mrf.mxu0 }
 0x281   :  { %v2175_v60 = vpop.f32.mrf.mxu0 }
 0x282   :  { %1952 = dma.done.wait [#allocation3], 1024 }
 0x283   :  { %1953 = vsyncadd [#allocation3], 4294966272  ;;  %524 = vadd.xlane.f32.xlu0 %v523_v61  ;;  %518 = vadd.xlane.f32.xlu1 %v517_v62  ;;  %v526_v63 = vsel %vm294_vm2, %v2049_v7, 0.0  ;;  %v520_v14 = vsel %vm294_vm2, %v2039_v5, 0.0  ;;  %v514_v15 = vsel %vm294_vm2, %v2029_v3, 0.0  ;;  %v511_v16 = vsel %vm294_vm2, %v2024_v2, 0.0 }
 0x284   :  { %v508_v17 = vsel %vm294_vm2, %v2019_v1, 0.0  ;;  %v505_v18 = vsel %vm294_vm2, %v2014_v0, 0.0  ;;  %v2195_v19 = vpack.c.bf16 %v2019_v1, %v2014_v0  ;;  %s1957_s23 = smov 96   ;;  %s1958_s2 = smov 32   ;;  %vm1406_vm4 = vcmask 162816  }
 0x285   :  { %s1960_s24 = smov 16   ;;  %s1961_s25 = smov 112   ;;  %vm1495_vm5 = vcmask 261248   ;;  %vm1504_vm6 = vcmask 392448   ;;  %vm1545_vm7 = vcmask 654720   ;;  %vm1586_vm8 = vcmask 818816  }
 0x286   :  { %1790 = vmatprep.mubr.msk.bf16.mxu1 %vm294_vm2, %v2195_v19  ;;  %s1962_s26 = smov 48   ;;  %s1963_s27 = smov [#allocation4]  }
 0x287   :  { %527 = vadd.xlane.f32.xlu0 %v526_v63  ;;  %521 = vadd.xlane.f32.xlu1 %v520_v14  ;;  %s1600_s28 = sshll.u32 %s1963_s27, 4  ;;  %s1601_s28 = int_to_ptr.vmem [resolvable:$true] %s1600_s28 }
 0x288   :  { %s1932_s0 = scalar_lea.vmem %s1601_s28, 1024  ;;  %p1937_p1 = scmp.lt.s32.totalorder %s1601_s28, %s1601_s28 }
 0x289   :  { %p1933_p0 = scmp.ne.s32.totalorder %s1601_s28, %s1932_s0  ;;  %p1938_p2 = scmp.lt.s32.totalorder %s1932_s0, %s1932_s0 }
 0x28b   :  { %515 = vadd.xlane.f32.xlu1 %v514_v15  ;;  %512 = vadd.xlane.f32.xlu0 %v511_v16  ;;  %p1939_p3 = por %p1938_p2, %p1937_p1 }
 0x28d   :  { %p1940_p4 = pnand %p1939_p3, %p1933_p0 }
 0x28f   :  { %509 = vadd.xlane.f32.xlu1 %v508_v17  ;;  %506 = vadd.xlane.f32.xlu0 %v505_v18 }
 0x30c   :  { %v525_v20 = vpop.xlane.xlu0 %524  ;;  %v519_v21 = vpop.xlane.xlu1 %518 }
 0x30d   :  { %v535_v22 = vadd.f32 1.0, %v525_v20  ;;  %v533_v23 = vadd.f32 1.0, %v519_v21  ;;  %v2233_v21 = vpack.c.bf16 %v2029_v3, %v2024_v2  ;;  %v1879_v2 = vld [vmem:[%s2714_s4 + $0x18] sm:$0xff]   ;;  %v1880_v3 = vld [vmem:[%s2714_s4 + $0x10] sm:$0xff]  }
 0x30e   :  { %1798 = vmatprep.subr.bf16.mxu0 %v1879_v2 }
 0x30f   :  { %1884 = vrsqrt.f32 %v535_v22  ;;  %v2237_v22 = vpack.c.bf16 %v2039_v5, %v2034_v4  ;;  %1799 = vmatpush3.bf16.msra.mxu0 %v1879_v2  ;;  %v1881_v4 = vld [vmem:[%s2714_s4 + $0x8] sm:$0xff]   ;;  %v1882_v5 = vld [vmem:[%s2714_s4] sm:$0xff]  }
 0x310   :  { %v528_v24 = vpop.xlane.xlu0 %527  ;;  %v522_v25 = vpop.xlane.xlu1 %521  ;;  %1886 = vrsqrt.f32 %v533_v23  ;;  %v2245_v23 = vpack.c.bf16 %v2049_v7, %v2044_v6  ;;  %1800 = vmatprep.subr.bf16.mxu0 %v1880_v3 }
 0x311   :  { %v536_v26 = vadd.f32 1.0, %v528_v24  ;;  %v534_v27 = vadd.f32 1.0, %v522_v25 }
 0x313   :  { %1888 = vrsqrt.f32 %v536_v26  ;;  %1801 = vmatpush3.bf16.msra.mxu0 %v1880_v3 }
 0x314   :  { %1890 = vrsqrt.f32 %v534_v27  ;;  %v516_v28 = vpop.xlane.xlu1 %515  ;;  %v513_v29 = vpop.xlane.xlu0 %512  ;;  %1802 = vmatprep.subr.bf16.mxu0 %v1881_v4 }
 0x315   :  { %v532_v31 = vadd.f32 1.0, %v516_v28  ;;  %v531_v0 = vadd.f32 1.0, %v513_v29 }
 0x317   :  { %1892 = vrsqrt.f32 %v532_v31  ;;  %1803 = vmatpush3.bf16.msra.mxu0 %v1881_v4 }
 0x318   :  { %1894 = vrsqrt.f32 %v531_v0  ;;  %v510_v1 = vpop.xlane.xlu1 %509  ;;  %v507_v34 = vpop.xlane.xlu0 %506  ;;  %1804 = vmatprep.subr.bf16.mxu0 %v1882_v5 }
 0x319   :  { %v530_v36 = vadd.f32 1.0, %v510_v1  ;;  %v529_v37 = vadd.f32 1.0, %v507_v34 }
 0x31b   :  { %1896 = vrsqrt.f32 %v530_v36  ;;  %1805 = vmatpush3.bf16.msra.mxu0 %v1882_v5 }
 0x31c   :  { %1898 = vrsqrt.f32 %v529_v37  ;;  %v2199_v38 = vpop.eup %1884 }
 0x31d   :  { %2732 = vst [vmem:[#allocation11_spill] sm:$0xff] %v2199_v38  ;;  %v2201_v39 = vpop.eup %1886  ;;  %v563_v42 = vmul.f32 %v2199_v38, %v2169_v57 }
 0x31e   :  { %2733 = vst [vmem:[#allocation12_spill] sm:$0xff] %v2201_v39  ;;  %v561_v44 = vmul.f32 %v2201_v39, %v2171_v58 }
 0x320   :  { %v2203_v40 = vpop.eup %1888 }
 0x321   :  { %2734 = vst [vmem:[#allocation13_spill] sm:$0xff] %v2203_v40  ;;  %v2205_v41 = vpop.eup %1890  ;;  %v564_v43 = vmul.f32 %v2203_v40, %v2173_v59 }
 0x322   :  { %2735 = vst [vmem:[#allocation14_spill] sm:$0xff] %v2205_v41  ;;  %v562_v45 = vmul.f32 %v2205_v41, %v2175_v60 }
 0x323   :  { %v568_v46 = vpack.c.bf16 %v564_v43, %v563_v42 }
 0x324   :  { %v2215_v51 = vpop.eup %1892  ;;  %v567_v61 = vpack.c.bf16 %v562_v45, %v561_v44  ;;  %v2290_v44 = vmul.f32 %v2199_v38, %v2199_v38 }
 0x325   :  { %2736 = vst [vmem:[#allocation15_spill] sm:$0xff] %v2215_v51  ;;  %v2217_v52 = vpop.eup %1894  ;;  %1782 = vmatprep.subr.bf16.mxu1 %v568_v46  ;;  %v560_v62 = vmul.f32 %v2215_v51, %v2165_v55  ;;  %v2274_v26 = vmul.f32 %v2215_v51, %v2215_v51 }
 0x326   :  { %2737 = vst [vmem:[#allocation16_spill] sm:$0xff] %v2217_v52  ;;  %1783 = vmatpush3.bf16.msra.mxu1 %v568_v46  ;;  %v559_v63 = vmul.f32 %v2217_v52, %v2161_v53  ;;  %v2265_v6 = vmul.f32 %v2217_v52, %v2217_v52  ;;  %v660_v4 = vmul.f32 %v2169_v57, %v2290_v44 }
 0x327   :  { %1784 = vmatprep.subr.bf16.mxu1 %v567_v61  ;;  %v657_v42 = vmul.f32 %v2165_v55, %v2274_v26 }
 0x328   :  { %v2223_v14 = vpop.eup %1896  ;;  %v566_v15 = vpack.c.bf16 %v560_v62, %v559_v63  ;;  %v656_v28 = vmul.f32 %v2161_v53, %v2265_v6  ;;  %v2297_v62 = vmul.f32 %v2201_v39, %v2201_v39 }
 0x329   :  { %2738 = vst [vmem:[#allocation17_spill] sm:$0xff] %v2223_v14  ;;  %v2225_v16 = vpop.eup %1898  ;;  %v558_v17 = vmul.f32 %v2223_v14, %v2167_v56  ;;  %v2283_v0 = vmul.f32 %v2223_v14, %v2223_v14 }
 0x32a   :  { %2739 = vst [vmem:[#allocation18_spill] sm:$0xff] %v2225_v16  ;;  %1785 = vmatpush3.bf16.msra.mxu1 %v567_v61  ;;  %v557_v18 = vmul.f32 %v2225_v16, %v2163_v54  ;;  %v2269_v7 = vmul.f32 %v2225_v16, %v2225_v16 }
 0x32b   :  { %1786 = vmatprep.subr.bf16.mxu1 %v566_v15  ;;  %v655_v61 = vmul.f32 %v2283_v0, %v2167_v56 }
 0x32c   :  { %v565_v20 = vpack.c.bf16 %v558_v17, %v557_v18  ;;  %v654_v31 = vmul.f32 %v2269_v7, %v2163_v54 }
 0x32e   :  { %1787 = vmatpush3.bf16.msra.mxu1 %v566_v15  ;;  %v2301_v15 = vmul.f32 %v2203_v40, %v2203_v40 }
 0x32f   :  { %1788 = vmatprep.subr.bf16.mxu1 %v565_v20 }
 0x332   :  { %1789 = vmatpush3.bf16.msra.mxu1 %v565_v20 }
 0x335   :  { %1791 = vmatmul.mubr.msk.bf16.vlgmr.msra.gmra.mxu1 %vm294_vm2, %v2233_v21 }
 0x336   :  { %1794 = vmatprep.mubr.msk.bf16.mxu1 %vm294_vm2, %v2237_v22 }
 0x33d   :  { %1795 = vmatmul.mubr.msk.bf16.gmra.mxu1 %vm294_vm2, %v2245_v23 }
 0x33e   :  { %1822 = vmatprep.mubr.msk.bf16.mxu1 %vm294_vm2, %v2195_v19 }
 0x3f5   :  { %v1792_v24 = vpop.f32.mrf.mxu1 }
 0x3f6   :  { %v648_v25 = vmul.f32 %v2217_v52, %v1792_v24  ;;  %v2311_v24 = vmul.f32 %v2205_v41, %v2205_v41 }
 0x3f7   :  { %v615_v27 = vpop.f32.mrf.mxu1 }
 0x3f8   :  { %v646_v29 = vmul.f32 %v2225_v16, %v615_v27  ;;  %v664_v34 = vadd.f32 %v656_v28, %v648_v25  ;;  %v658_v28 = vmul.f32 %v2297_v62, %v2171_v58 }
 0x3f9   :  { %v1793_v1 = vpop.f32.mrf.mxu1 }
 0x3fa   :  { %v662_v36 = vadd.f32 %v654_v31, %v646_v29  ;;  %v649_v37 = vmul.f32 %v2215_v51, %v1793_v1  ;;  %v676_v18 = vmul.f32 %v2054_v8, %v664_v34  ;;  %v661_v1 = vmul.f32 %v2173_v59, %v2301_v15 }
 0x3fb   :  { %v618_v43 = vpop.f32.mrf.mxu1 }
 0x3fc   :  { %v665_v45 = vadd.f32 %v657_v42, %v649_v37  ;;  %v647_v46 = vmul.f32 %v2223_v14, %v618_v43  ;;  %v674_v17 = vmul.f32 %v2054_v8, %v662_v36  ;;  %v688_v36 = vadd.f32 %v2059_v9, %v676_v18 }
 0x3fd   :  { %v1796_v63 = vpop.f32.mrf.mxu1 }
 0x3fe   :  { %v677_v20 = vmul.f32 %v2054_v8, %v665_v45  ;;  %v663_v2 = vadd.f32 %v655_v61, %v647_v46  ;;  %v652_v3 = vmul.f32 %v2199_v38, %v1796_v63  ;;  %v686_v34 = vadd.f32 %v2059_v9, %v674_v17 }
 0x3ff   :  { %v631_v5 = vpop.f32.mrf.mxu1  ;;  %v659_v46 = vmul.f32 %v2311_v24, %v2175_v60  ;;  %v696_v13 = vmax.f32 %v688_v36, 0.0 }
 0x400   :  { %v689_v25 = vadd.f32 %v2059_v9, %v677_v20  ;;  %v650_v27 = vmul.f32 %v2201_v39, %v631_v5  ;;  %v675_v29 = vmul.f32 %v2054_v8, %v663_v2  ;;  %v668_v37 = vadd.f32 %v660_v4, %v652_v3 }
 0x401   :  { %v1797_v31 = vpop.f32.mrf.mxu1  ;;  %v694_v12 = vmax.f32 %v686_v34, 0.0 }
 0x402   :  { %v666_v42 = vadd.f32 %v658_v28, %v650_v27  ;;  %v653_v43 = vmul.f32 %v2203_v40, %v1797_v31  ;;  %v687_v61 = vadd.f32 %v2059_v9, %v675_v29  ;;  %v697_v63 = vmax.f32 %v689_v25, 0.0 }
 0x403   :  { %v634_v45 = vpop.f32.mrf.mxu1  ;;  %v680_v18 = vmul.f32 %v2054_v8, %v668_v37 }
 0x404   :  { %v678_v20 = vmul.f32 %v2054_v8, %v666_v42  ;;  %v669_v2 = vadd.f32 %v661_v1, %v653_v43  ;;  %v651_v5 = vmul.f32 %v2205_v41, %v634_v45  ;;  %v695_v17 = vmax.f32 %v687_v61, 0.0 }
 0x405   :  { %v703_v29 = vpack.c.bf16 %v697_v63, %v696_v13  ;;  %v692_v1 = vadd.f32 %v2059_v9, %v680_v18 }
 0x406   :  { %v681_v3 = vmul.f32 %v2054_v8, %v669_v2  ;;  %v667_v4 = vadd.f32 %v659_v46, %v651_v5  ;;  %v702_v27 = vpack.c.bf16 %v695_v17, %v694_v12  ;;  %v690_v28 = vadd.f32 %v2059_v9, %v678_v20 }
 0x407   :  { %v700_v43 = vmax.f32 %v692_v1, 0.0 }
 0x408   :  { %v693_v31 = vadd.f32 %v2059_v9, %v681_v3  ;;  %v679_v25 = vmul.f32 %v2054_v8, %v667_v4  ;;  %1806 = vmatprep.mubr.msk.bf16.mxu0 %vm294_vm2, %v702_v27  ;;  %v698_v36 = vmax.f32 %v690_v28, 0.0 }
 0x409   :  { %1807 = vmatmul.mubr.msk.bf16.vlgmr.msra.gmra.mxu0 %vm294_vm2, %v703_v29 }
 0x40a   :  { %v691_v34 = vadd.f32 %v2059_v9, %v679_v25  ;;  %v701_v37 = vmax.f32 %v693_v31, 0.0 }
 0x40c   :  { %v699_v42 = vmax.f32 %v691_v34, 0.0  ;;  %v705_v45 = vpack.c.bf16 %v701_v37, %v700_v43 }
 0x40e   :  { %v704_v12 = vpack.c.bf16 %v699_v42, %v698_v36  ;;  %v1883_v36 = vld [vmem:[%s2716_s6] sm:$0xff]   ;;  %s1956_s6 = smov 64  }
 0x40f   :  { %1830 = vmatprep.subr.bf16.mxu0 %v1883_v36 }
 0x410   :  { %1810 = vmatprep.mubr.msk.bf16.mxu0 %vm294_vm2, %v704_v12  ;;  %1831 = vmatpush3.bf16.msra.mxu0 %v1883_v36 }
 0x411   :  { %1811 = vmatmul.mubr.msk.bf16.gmra.mxu0 %vm294_vm2, %v705_v45 }
 0x4c9   :  { %v1808_v8 = vpop.f32.mrf.mxu0 }
 0x4ca   :  { %v817_v31 = vmul.f32 %v2217_v52, %v1808_v8  ;;  %v902_v43 = vmul.f32 %v1808_v8, %v2265_v6 }
 0x4cb   :  { %v784_v13 = vpop.f32.mrf.mxu0 }
 0x4cc   :  { %v815_v1 = vmul.f32 %v2225_v16, %v784_v13  ;;  %v900_v45 = vmul.f32 %v784_v13, %v2269_v7 }
 0x4cd   :  { %v1809_v46 = vpop.f32.mrf.mxu0 }
 0x4ce   :  { %v818_v27 = vmul.f32 %v2215_v51, %v1809_v46 }
 0x4cf   :  { %v787_v61 = vpop.f32.mrf.mxu0 }
 0x4d0   :  { %v824_v25 = vpack.c.bf16 %v818_v27, %v817_v31  ;;  %v816_v29 = vmul.f32 %v2223_v14, %v787_v61 }
 0x4d1   :  { %v1812_v63 = vpop.f32.mrf.mxu0 }
 0x4d2   :  { %v821_v9 = vmul.f32 %v2199_v38, %v1812_v63  ;;  %v823_v34 = vpack.c.bf16 %v816_v29, %v815_v1  ;;  %v906_v36 = vmul.f32 %v1812_v63, %v2290_v44 }
 0x4d3   :  { %v800_v20 = vpop.f32.mrf.mxu0 }
 0x4d4   :  { %v819_v18 = vmul.f32 %v2201_v39, %v800_v20 }
 0x4d5   :  { %v1813_v2 = vpop.f32.mrf.mxu0 }
 0x4d6   :  { %v822_v5 = vmul.f32 %v2203_v40, %v1813_v2 }
 0x4d7   :  { %v2341_v17 = vpop.f32.mrf.mxu0 }
 0x4d8   :  { %v826_v3 = vpack.c.bf16 %v822_v5, %v821_v9  ;;  %v820_v4 = vmul.f32 %v2205_v41, %v2341_v17 }
 0x4da   :  { %v825_v28 = vpack.c.bf16 %v820_v4, %v819_v18  ;;  %1814 = vmatprep.subr.bf16.mxu1 %v826_v3 }
 0x4db   :  { %1815 = vmatpush3.bf16.msra.mxu1 %v826_v3 }
 0x4dc   :  { %1816 = vmatprep.subr.bf16.mxu1 %v825_v28 }
 0x4df   :  { %1817 = vmatpush3.bf16.msra.mxu1 %v825_v28  ;;  %v901_v28 = vmul.f32 %v787_v61, %v2283_v0 }
 0x4e0   :  { %1818 = vmatprep.subr.bf16.mxu1 %v824_v25 }
 0x4e3   :  { %1819 = vmatpush3.bf16.msra.mxu1 %v824_v25 }
 0x4e4   :  { %1820 = vmatprep.subr.bf16.mxu1 %v823_v34 }
 0x4e7   :  { %1821 = vmatpush3.bf16.msra.mxu1 %v823_v34 }
 0x4ea   :  { %1823 = vmatmul.mubr.msk.bf16.vlgmr.msra.gmra.mxu1 %vm294_vm2, %v2233_v21 }
 0x4eb   :  { %1826 = vmatprep.mubr.msk.bf16.mxu1 %vm294_vm2, %v2237_v22 }
 0x4f2   :  { %1827 = vmatmul.mubr.msk.bf16.gmra.mxu1 %vm294_vm2, %v2245_v23 }
 0x4f3   :  { %1848 = vmatprep.mubr.msk.bf16.mxu1 %vm294_vm2, %v2195_v19  ;;  %v903_v19 = vmul.f32 %v1809_v46, %v2274_v26  ;;  %v904_v46 = vmul.f32 %v800_v20, %v2297_v62 }
 0x5aa   :  { %v1824_v37 = vpop.f32.mrf.mxu1 }
 0x5ab   :  { %v894_v42 = vmul.f32 %v2217_v52, %v1824_v37 }
 0x5ac   :  { %v861_v12 = vpop.f32.mrf.mxu1 }
 0x5ad   :  { %v892_v9 = vmul.f32 %v2225_v16, %v861_v12  ;;  %v910_v5 = vadd.f32 %v902_v43, %v894_v42 }
 0x5ae   :  { %v1825_v18 = vpop.f32.mrf.mxu1 }
 0x5af   :  { %v908_v3 = vadd.f32 %v900_v45, %v892_v9  ;;  %v895_v4 = vmul.f32 %v2215_v51, %v1825_v18  ;;  %v922_v29 = vmul.f32 %v2064_v10, %v910_v5  ;;  %v907_v9 = vmul.f32 %v1813_v2, %v2301_v15 }
 0x5b0   :  { %v864_v27 = vpop.f32.mrf.mxu1  ;;  %v905_v2 = vmul.f32 %v2341_v17, %v2311_v24 }
 0x5b1   :  { %v920_v31 = vmul.f32 %v2064_v10, %v908_v3  ;;  %v911_v25 = vadd.f32 %v903_v19, %v895_v4  ;;  %v893_v8 = vmul.f32 %v2223_v14, %v864_v27  ;;  %v934_v5 = vadd.f32 %v2069_v11, %v922_v29 }
 0x5b2   :  { %v1828_v13 = vpop.f32.mrf.mxu1 }
 0x5b3   :  { %v923_v1 = vmul.f32 %v2064_v10, %v911_v25  ;;  %v909_v34 = vadd.f32 %v901_v28, %v893_v8  ;;  %v898_v37 = vmul.f32 %v2199_v38, %v1828_v13  ;;  %v932_v61 = vadd.f32 %v2069_v11, %v920_v31 }
 0x5b4   :  { %v877_v42 = vpop.f32.mrf.mxu1  ;;  %v2391_v8 = vmax.f32 %v934_v5, 0.0 }
 0x5b5   :  { %v935_v43 = vadd.f32 %v2069_v11, %v923_v1  ;;  %v921_v12 = vmul.f32 %v2064_v10, %v909_v34  ;;  %v896_v45 = vmul.f32 %v2201_v39, %v877_v42  ;;  %v914_v19 = vadd.f32 %v906_v36, %v898_v37 }
 0x5b6   :  { %v1829_v18 = vpop.f32.mrf.mxu1  ;;  %v2385_v28 = vmax.f32 %v932_v61, 0.0 }
 0x5b7   :  { %v933_v63 = vadd.f32 %v2069_v11, %v921_v12  ;;  %v912_v20 = vadd.f32 %v904_v46, %v896_v45  ;;  %v899_v3 = vmul.f32 %v2203_v40, %v1829_v18  ;;  %v2383_v4 = vmax.f32 %v935_v43, 0.0 }
 0x5b8   :  { %v880_v27 = vpop.f32.mrf.mxu1  ;;  %v926_v1 = vmul.f32 %v2064_v10, %v914_v19 }
 0x5b9   :  { %v2387_v31 = vmax.f32 %v933_v63, 0.0  ;;  %v915_v25 = vadd.f32 %v907_v9, %v899_v3  ;;  %v924_v29 = vmul.f32 %v2064_v10, %v912_v20  ;;  %v897_v13 = vmul.f32 %v2205_v41, %v880_v27 }
 0x5ba   :  { %v949_v46 = vpack.c.bf16 %v2383_v4, %v2391_v8  ;;  %v938_v43 = vadd.f32 %v2069_v11, %v926_v1 }
 0x5bb   :  { %v927_v34 = vmul.f32 %v2064_v10, %v915_v25  ;;  %v948_v36 = vpack.c.bf16 %v2387_v31, %v2385_v28  ;;  %v913_v37 = vadd.f32 %v905_v2, %v897_v13  ;;  %v936_v17 = vadd.f32 %v2069_v11, %v924_v29 }
 0x5bc   :  { %v2414_v18 = vmax.f32 %v938_v43, 0.0 }
 0x5bd   :  { %v939_v42 = vadd.f32 %v2069_v11, %v927_v34  ;;  %1832 = vmatprep.mubr.msk.bf16.mxu0 %vm416_vm3, %v948_v36  ;;  %v925_v61 = vmul.f32 %v2064_v10, %v913_v37  ;;  %v2410_v9 = vmax.f32 %v936_v17, 0.0 }
 0x5be   :  { %1833 = vmatmul.mubr.msk.bf16.vlgmr.msra.gmra.mxu0 %vm416_vm3, %v949_v46  ;;  %2741 = vst [vmem:[#allocation20_spill] sm:$0xff] %v2414_v18 }
 0x5bf   :  { %v937_v12 = vadd.f32 %v2069_v11, %v925_v61  ;;  %v2408_v45 = vmax.f32 %v939_v42, 0.0 }
 0x5c1   :  { %2740 = vst [vmem:[#allocation19_spill] sm:$0xff] %v2408_v45  ;;  %v2412_v5 = vmax.f32 %v937_v12, 0.0  ;;  %v951_v10 = vpack.c.bf16 %v2408_v45, %v2414_v18 }
 0x5c3   :  { %v950_v63 = vpack.c.bf16 %v2412_v5, %v2410_v9 }
 0x5c5   :  { %1836 = vmatprep.mubr.msk.bf16.mxu0 %vm416_vm3, %v950_v63 }
 0x5c6   :  { %1837 = vmatmul.mubr.msk.bf16.gmra.mxu0 %vm416_vm3, %v951_v10 }
 0x67e   :  { %v1834_v19 = vpop.f32.mrf.mxu0 }
 0x680   :  { %v1006_v11 = vpop.f32.mrf.mxu0 }
 0x682   :  { %v1835_v20 = vpop.f32.mrf.mxu0 }
 0x684   :  { %v1009_v3 = vpop.f32.mrf.mxu0 }
 0x686   :  { %v1838_v27 = vpop.f32.mrf.mxu0 }
 0x687   :  { %1057 = vrot.lane.b32.xlu0 %v1838_v27, %s1956_s6 }
 0x688   :  { %v1022_v25 = vpop.f32.mrf.mxu0 }
 0x689   :  { %1053 = vrot.lane.b32.xlu1 %v1022_v25, %s1956_s6 }
 0x68a   :  { %v1839_v2 = vpop.f32.mrf.mxu0 }
 0x68b   :  { %1049 = vrot.lane.b32.xlu0 %v1834_v19, %s1956_s6 }
 0x68c   :  { %v1025_v29 = vpop.f32.mrf.mxu0 }
 0x68d   :  { %1059 = vrot.lane.b32.xlu1 %v1839_v2, %s1956_s6 }
 0x68f   :  { %1045 = vrot.lane.b32.xlu0 %v1006_v11, %s1956_s6 }
 0x691   :  { %1055 = vrot.lane.b32.xlu1 %v1025_v29, %s1956_s6 }
 0x695   :  { %1051 = vrot.lane.b32.xlu1 %v1835_v20, %s1956_s6 }
 0x699   :  { %1047 = vrot.lane.b32.xlu1 %v1009_v3, %s1956_s6 }
 0x6f9   :  { %v1058_v13 = vpop.permute.xlu0 %1057 }
 0x6fb   :  { %v1054_v1 = vpop.permute.xlu1 %1053 }
 0x6fc   :  { %v2431_v46 = vadd.f32 %v1054_v1, %v2171_v58  ;;  %v1240_v1 = vmul.f32 %v2139_v35, %v2139_v35 }
 0x6fd   :  { %v1050_v36 = vpop.permute.xlu0 %1049 }
 0x6fe   :  { %v1081_v17 = vmul.f32 %v2201_v39, %v2431_v46  ;;  %v2439_v61 = vadd.f32 %v2161_v53, %v1050_v36  ;;  %v1252_v36 = vsel %vm416_vm3, %v1240_v1, 0.0  ;;  %v1275_v1 = vmul.f32 %v2412_v5, %v2412_v5 }
 0x6ff   :  { %v1060_v34 = vpop.permute.xlu1 %1059 }
 0x700   :  { %v2444_v10 = vadd.f32 %v2173_v59, %v1060_v34  ;;  %v1079_v11 = vmul.f32 %v2217_v52, %v2439_v61  ;;  %v1239_v34 = vmul.f32 %v2137_v33, %v2137_v33 }
 0x701   :  { %v1046_v12 = vpop.permute.xlu0 %1045 }
 0x702   :  { %v2455_v53 = vadd.f32 %v1046_v12, %v2163_v54 }
 0x703   :  { %v1056_v37 = vpop.permute.xlu1 %1055 }
 0x704   :  { %v2434_v42 = vadd.f32 %v1056_v37, %v2175_v60  ;;  %v2450_v60 = vadd.f32 %v2169_v57, %v1058_v13  ;;  %v1077_v54 = vmul.f32 %v2225_v16, %v2455_v53  ;;  %v1241_v37 = vmul.f32 %v2133_v30, %v2133_v30 }
 0x706   :  { %v1082_v43 = vmul.f32 %v2205_v41, %v2434_v42  ;;  %v1083_v27 = vmul.f32 %v2199_v38, %v2450_v60  ;;  %v1255_v12 = vsel %vm416_vm3, %v1241_v37, 0.0  ;;  %v1293_v37 = vsel %vm416_vm3, %v1275_v1, 0.0 }
 0x707   :  { %v1052_v63 = vpop.permute.xlu1 %1051  ;;  %v1315_v41 = vmul.f32 2.0, %v2434_v42 }
 0x708   :  { %v2447_v58 = vadd.f32 %v2165_v55, %v1052_v63  ;;  %v1087_v19 = vpack.c.bf16 %v1082_v43, %v1081_v17  ;;  %v1084_v55 = vmul.f32 %v2203_v40, %v2444_v10  ;;  %v1249_v17 = vsel %vm416_vm3, %v1239_v34, 0.0 }
 0x709   :  { %v1243_v43 = vmul.f32 %v2151_v49, %v2151_v49  ;;  %v1242_v63 = vmul.f32 %v2149_v48, %v2149_v48 }
 0x70a   :  { %v1080_v20 = vmul.f32 %v2215_v51, %v2447_v58  ;;  %1097 = vrot.lane.b32.xlu1 %v1087_v19, %s1956_s6  ;;  %v1088_v2 = vpack.c.bf16 %v1084_v55, %v1083_v27 }
 0x70b   :  { %v1048_v59 = vpop.permute.xlu1 %1047  ;;  %v1261_v19 = vsel %vm416_vm3, %v1243_v43, 0.0 }
 0x70c   :  { %v2463_v3 = vadd.f32 %v1048_v59, %v2167_v56  ;;  %v1086_v57 = vpack.c.bf16 %v1080_v20, %v1079_v11  ;;  %v1238_v56 = vmul.f32 %v2135_v32, %v2135_v32  ;;  %v1245_v11 = vmul.f32 %v2147_v47, %v2147_v47 }
 0x70d   :  { %v1258_v20 = vsel %vm416_vm3, %v1242_v63, 0.0  ;;  %v1244_v59 = vmul.f32 %v2153_v50, %v2153_v50 }
 0x70e   :  { %v1078_v25 = vmul.f32 %v2223_v14, %v2463_v3  ;;  %1095 = vrot.lane.b32.xlu0 %v1086_v57, %s1956_s6  ;;  %v1246_v13 = vsel %vm416_vm3, %v1238_v56, 0.0  ;;  %v1267_v55 = vsel %vm416_vm3, %v1245_v11, 0.0  ;;  %v1271_v57 = vmul.f32 %v2387_v31, %v2387_v31  ;;  %v2742_v11 = vld [vmem:[#allocation10_spill] sm:$0xff] }
 0x70f   :  { %v1264_v27 = vsel %vm416_vm3, %v1244_v59, 0.0  ;;  %v1272_v56 = vmul.f32 %v2391_v8, %v2391_v8  ;;  %v1311_v39 = vmul.f32 2.0, %v2463_v3 }
 0x710   :  { %v1085_v29 = vpack.c.bf16 %v1078_v25, %v1077_v54  ;;  %v1270_v54 = vmul.f32 %v2385_v28, %v2385_v28  ;;  %v1281_v25 = vsel %vm416_vm3, %v1271_v57, 0.0 }
 0x711   :  { %v1284_v34 = vsel %vm416_vm3, %v1272_v56, 0.0 }
 0x712   :  { %1099 = vrot.lane.b32.xlu0 %v1088_v2, %s1956_s6  ;;  %1093 = vrot.lane.b32.xlu1 %v1085_v29, %s1956_s6  ;;  %v1273_v2 = vmul.f32 %v2383_v4, %v2383_v4  ;;  %v1278_v29 = vsel %vm416_vm3, %v1270_v54, 0.0 }
 0x731   :  { %1247 = vadd.xlane.f32.xlu0 %v1246_v13  ;;  %v1287_v13 = vsel %vm416_vm3, %v1273_v2, 0.0 }
 0x735   :  { %1253 = vadd.xlane.f32.xlu0 %v1252_v36  ;;  %v1274_v36 = vmul.f32 %v2410_v9, %v2410_v9 }
 0x736   :  { %1250 = vadd.xlane.f32.xlu1 %v1249_v17  ;;  %v1277_v17 = vmul.f32 %v2408_v45, %v2408_v45 }
 0x737   :  { %v1290_v43 = vsel %vm416_vm3, %v1274_v36, 0.0 }
 0x738   :  { %v1299_v63 = vsel %vm416_vm3, %v1277_v17, 0.0 }
 0x739   :  { %1256 = vadd.xlane.f32.xlu0 %v1255_v12  ;;  %v1276_v12 = vmul.f32 %v2414_v18, %v2414_v18 }
 0x73a   :  { %1262 = vadd.xlane.f32.xlu1 %v1261_v19 }
 0x73b   :  { %v1296_v19 = vsel %vm416_vm3, %v1276_v12, 0.0 }
 0x73d   :  { %1259 = vadd.xlane.f32.xlu0 %v1258_v20 }
 0x73e   :  { %1268 = vadd.xlane.f32.xlu1 %v1267_v55 }
 0x741   :  { %1265 = vadd.xlane.f32.xlu0 %v1264_v27 }
 0x742   :  { %1282 = vadd.xlane.f32.xlu1 %v1281_v25 }
 0x745   :  { %1279 = vadd.xlane.f32.xlu0 %v1278_v29 }
 0x746   :  { %1288 = vadd.xlane.f32.xlu1 %v1287_v13 }
 0x749   :  { %1285 = vadd.xlane.f32.xlu0 %v1284_v34 }
 0x74a   :  { %1294 = vadd.xlane.f32.xlu1 %v1293_v37 }
 0x74d   :  { %1291 = vadd.xlane.f32.xlu0 %v1290_v43 }
 0x74e   :  { %1300 = vadd.xlane.f32.xlu1 %v1299_v63 }
 0x751   :  { %1297 = vadd.xlane.f32.xlu0 %v1296_v19 }
 0x767   :  { %1331 = vrot.lane.b32.xlu0 %v2742_v11, %s1957_s23 }
 0x77c   :  { %v1098_v55 = vpop.permute.xlu1 %1097 }
 0x780   :  { %v1096_v20 = vpop.permute.xlu0 %1095 }
 0x784   :  { %v1100_v59 = vpop.permute.xlu0 %1099  ;;  %v1094_v57 = vpop.permute.xlu1 %1093 }
 0x785   :  { %1840 = vmatprep.subr.bf16.mxu1 %v1100_v59 }
 0x786   :  { %1841 = vmatpush3.bf16.msra.mxu1 %v1100_v59  ;;  %v1310_v59 = vmul.f32 2.0, %v2455_v53 }
 0x787   :  { %1842 = vmatprep.subr.bf16.mxu1 %v1098_v55 }
 0x78a   :  { %1843 = vmatpush3.bf16.msra.mxu1 %v1098_v55  ;;  %v1313_v55 = vmul.f32 2.0, %v2447_v58 }
 0x78b   :  { %1844 = vmatprep.subr.bf16.mxu1 %v1096_v20 }
 0x78e   :  { %1845 = vmatpush3.bf16.msra.mxu1 %v1096_v20 }
 0x78f   :  { %1846 = vmatprep.subr.bf16.mxu1 %v1094_v57 }
 0x792   :  { %1847 = vmatpush3.bf16.msra.mxu1 %v1094_v57  ;;  %v1312_v57 = vmul.f32 2.0, %v2439_v61 }
 0x795   :  { %1849 = vmatmul.mubr.msk.bf16.vlgmr.msra.gmra.mxu1 %vm294_vm2, %v2233_v21 }
 0x796   :  { %1852 = vmatprep.mubr.msk.bf16.mxu1 %vm294_vm2, %v2237_v22 }
 0x79d   :  { %1853 = vmatmul.mubr.msk.bf16.gmra.mxu1 %vm294_vm2, %v2245_v23 }
 0x7ba   :  { %v1248_v27 = vpop.xlane.xlu0 %1247 }
 0x7be   :  { %v1254_v54 = vpop.xlane.xlu0 %1253 }
 0x7bf   :  { %v1251_v25 = vpop.xlane.xlu1 %1250 }
 0x7c2   :  { %v1257_v2 = vpop.xlane.xlu0 %1256 }
 0x7c3   :  { %v1263_v29 = vpop.xlane.xlu1 %1262 }
 0x7c6   :  { %v1260_v56 = vpop.xlane.xlu0 %1259 }
 0x7c7   :  { %v1269_v13 = vpop.xlane.xlu1 %1268 }
 0x7ca   :  { %v1266_v1 = vpop.xlane.xlu0 %1265 }
 0x7cb   :  { %v1283_v34 = vpop.xlane.xlu1 %1282 }
 0x7cc   :  { %v1303_v11 = vadd.f32 %v1283_v34, %v1251_v25  ;;  %v1317_v25 = vmul.f32 2.0, %v2444_v10 }
 0x7ce   :  { %v1280_v36 = vpop.xlane.xlu0 %1279 }
 0x7cf   :  { %v1289_v37 = vpop.xlane.xlu1 %1288  ;;  %v1302_v12 = vadd.f32 %v1280_v36, %v1248_v27 }
 0x7d0   :  { %v1305_v63 = vadd.f32 %v1289_v37, %v1257_v2  ;;  %v1319_v2 = vsub.f32 %v1303_v11, %v1311_v39 }
 0x7d1   :  { %v1318_v40 = vsub.f32 %v1302_v12, %v1310_v59 }
 0x7d2   :  { %v1286_v17 = vpop.xlane.xlu0 %1285  ;;  %v1321_v16 = vsub.f32 %v1305_v63, %v1313_v55  ;;  %v1316_v63 = vmul.f32 2.0, %v2450_v60 }
 0x7d3   :  { %v1295_v43 = vpop.xlane.xlu1 %1294  ;;  %v1304_v22 = vadd.f32 %v1286_v17, %v1254_v54 }
 0x7d4   :  { %v1307_v23 = vadd.f32 %v1295_v43, %v1263_v29  ;;  %v1314_v43 = vmul.f32 2.0, %v2431_v46 }
 0x7d5   :  { %v1320_v27 = vsub.f32 %v1304_v22, %v1312_v57 }
 0x7d6   :  { %v1292_v21 = vpop.xlane.xlu0 %1291  ;;  %v1323_v54 = vsub.f32 %v1307_v23, %v1315_v41 }
 0x7d7   :  { %v1301_v19 = vpop.xlane.xlu1 %1300  ;;  %v1306_v34 = vadd.f32 %v1292_v21, %v1260_v56 }
 0x7d8   :  { %v1309_v38 = vadd.f32 %v1301_v19, %v1269_v13 }
 0x7d9   :  { %v1322_v22 = vsub.f32 %v1306_v34, %v1314_v43 }
 0x7da   :  { %v1298_v20 = vpop.xlane.xlu0 %1297  ;;  %v1325_v52 = vsub.f32 %v1309_v38, %v1317_v25 }
 0x7db   :  { %v1308_v14 = vadd.f32 %v1298_v20, %v1266_v1 }
 0x7dd   :  { %v1324_v56 = vsub.f32 %v1308_v14, %v1316_v63  ;;  %v1179_v63 = vmul.f32 %v2463_v3, %v2283_v0  ;;  %v1180_v0 = vmul.f32 %v2439_v61, %v2265_v6  ;;  %v1181_v3 = vmul.f32 %v2447_v58, %v2274_v26 }
 0x7de   :  { %v1332_v29 = vpop.permute.xlu0 %1331 }
 0x7df   :  { %v1334_v36 = vadd.f32 %v1332_v29, %v1318_v40  ;;  %v1336_v37 = vadd.f32 %v1332_v29, %v1320_v27  ;;  %v1337_v17 = vadd.f32 %v1332_v29, %v1321_v16  ;;  %v1339_v51 = vadd.f32 %v1332_v29, %v1323_v54 }
 0x7e0   :  { %v1335_v45 = vadd.f32 %v1332_v29, %v1319_v2  ;;  %v1341_v39 = vadd.f32 %v1332_v29, %v1325_v52  ;;  %v1338_v40 = vadd.f32 %v1332_v29, %v1322_v22  ;;  %v1340_v20 = vadd.f32 %v1332_v29, %v1324_v56 }
 0x7e1   :  { %v1342_v18 = vmax.f32 %v1334_v36, 0.0  ;;  %v1344_v13 = vmax.f32 %v1336_v37, 0.0  ;;  %v1345_v12 = vmax.f32 %v1337_v17, 0.0  ;;  %v1347_v41 = vmax.f32 %v1339_v51, 0.0 }
 0x7e2   :  { %v1343_v21 = vmax.f32 %v1335_v45, 0.0  ;;  %v1349_v59 = vmax.f32 %v1341_v39, 0.0  ;;  %v1346_v55 = vmax.f32 %v1338_v40, 0.0  ;;  %v1348_v51 = vmax.f32 %v1340_v20, 0.0 }
 0x7e3   :  { %v1352_v19 = vadd.f32 1.0, %v1344_v13  ;;  %v1353_v11 = vadd.f32 1.0, %v1345_v12  ;;  %v1350_v16 = vadd.f32 1.0, %v1342_v18  ;;  %v1355_v38 = vadd.f32 1.0, %v1347_v41 }
 0x7e4   :  { %v1351_v57 = vadd.f32 1.0, %v1343_v21  ;;  %v1357_v2 = vadd.f32 1.0, %v1349_v59  ;;  %v1354_v52 = vadd.f32 1.0, %v1346_v55  ;;  %v1356_v45 = vadd.f32 1.0, %v1348_v51 }
 0x7e5   :  { %v1360_v23 = vadd.f32 1e-08, %v1352_v19  ;;  %v1361_v1 = vadd.f32 1e-08, %v1353_v11  ;;  %v1358_v27 = vadd.f32 1e-08, %v1350_v16  ;;  %v1183_v41 = vmul.f32 %v2434_v42, %v2311_v24 }
 0x7e6   :  { %v1363_v54 = vadd.f32 1e-08, %v1355_v38  ;;  %v1359_v25 = vadd.f32 1e-08, %v1351_v57  ;;  %v1365_v14 = vadd.f32 1e-08, %v1357_v2  ;;  %v1178_v22 = vmul.f32 %v2455_v53, %v2269_v7 }
 0x7e7   :  { %1900 = vrcp.f32 %v1360_v23  ;;  %v1362_v18 = vadd.f32 1e-08, %v1354_v52  ;;  %v1364_v34 = vadd.f32 1e-08, %v1356_v45  ;;  %v1182_v24 = vmul.f32 %v2431_v46, %v2297_v62 }
 0x7e8   :  { %1902 = vrcp.f32 %v1361_v1  ;;  %v1959_v59 = vmov 0.0  }
 0x7e9   :  { %1904 = vrcp.f32 %v1358_v27  ;;  %1448 = vst [vmem:[#allocation4 + $0x8] sm:$0xff] %v1959_v59  ;;  %1447 = vst [vmem:[#allocation4] sm:$0xff] %v1959_v59 }
 0x7ea   :  { %1906 = vrcp.f32 %v1363_v54  ;;  %1449 = vst [vmem:[#allocation4 + $0x10] sm:$0xff] %v1959_v59  ;;  %1450 = vst [vmem:[#allocation4 + $0x18] sm:$0xff] %v1959_v59 }
 0x7eb   :  { %1908 = vrcp.f32 %v1359_v25  ;;  %1451 = vst [vmem:[#allocation4 + $0x20] sm:$0xff] %v1959_v59  ;;  %1452 = vst [vmem:[#allocation4 + $0x28] sm:$0xff] %v1959_v59 }
 0x7ec   :  { %1910 = vrcp.f32 %v1365_v14  ;;  %1453 = vst [vmem:[#allocation4 + $0x30] sm:$0xff] %v1959_v59  ;;  %1454 = vst [vmem:[#allocation4 + $0x38] sm:$0xff] %v1959_v59 }
 0x7ed   :  { %1912 = vrcp.f32 %v1362_v18  ;;  %1456 = vst.msk [vmem:[#allocation4 + $0x8] sm:$0xff] %vm416_vm3, %v2137_v33  ;;  %1455 = vst.msk [vmem:[#allocation4] sm:$0xff] %vm416_vm3, %v2135_v32  ;;  %v1184_v32 = vmul.f32 %v2450_v60, %v2290_v44  ;;  %v1185_v33 = vmul.f32 %v2444_v10, %v2301_v15 }
 0x7ee   :  { %1914 = vrcp.f32 %v1364_v34  ;;  %1457 = vst.msk [vmem:[#allocation4 + $0x10] sm:$0xff] %vm416_vm3, %v2139_v35  ;;  %1458 = vst.msk [vmem:[#allocation4 + $0x18] sm:$0xff] %vm416_vm3, %v2133_v30  ;;  %v2743_v30 = vld [vmem:[#allocation20_spill] sm:$0xff]  ;;  %v2744_v35 = vld [vmem:[#allocation19_spill] sm:$0xff] }
 0x7ef   :  { %1459 = vst.msk [vmem:[#allocation4 + $0x20] sm:$0xff] %vm416_vm3, %v2149_v48  ;;  %1460 = vst.msk [vmem:[#allocation4 + $0x28] sm:$0xff] %vm416_vm3, %v2151_v49 }
 0x7f0   :  { %1461 = vst.msk [vmem:[#allocation4 + $0x30] sm:$0xff] %vm416_vm3, %v2153_v50  ;;  %1462 = vst.msk [vmem:[#allocation4 + $0x38] sm:$0xff] %vm416_vm3, %v2147_v47 }
 0x7f4   :  { %v2537_v29 = vpop.eup %1900 }
 0x7f5   :  { %v2539_v36 = vpop.eup %1902  ;;  %1386 = vrot.lane.b32.xlu1 %v2537_v29, %s1958_s2 }
 0x7f6   :  { %1388 = vrot.lane.b32.xlu0 %v2539_v36, %s1958_s2  ;;  %v2543_v37 = vpop.eup %1904 }
 0x7f7   :  { %v2545_v17 = vpop.eup %1906 }
 0x7f8   :  { %v2549_v43 = vpop.eup %1908 }
 0x7f9   :  { %1382 = vrot.lane.b32.xlu1 %v2543_v37, %s1958_s2  ;;  %v2551_v13 = vpop.eup %1910 }
 0x7fa   :  { %1392 = vrot.lane.b32.xlu0 %v2545_v17, %s1958_s2  ;;  %v2555_v12 = vpop.eup %1912 }
 0x7fb   :  { %v2561_v39 = vpop.eup %1914 }
 0x7fd   :  { %1384 = vrot.lane.b32.xlu1 %v2549_v43, %s1958_s2 }
 0x7fe   :  { %1396 = vrot.lane.b32.xlu0 %v2551_v13, %s1958_s2 }
 0x801   :  { %1390 = vrot.lane.b32.xlu1 %v2555_v12, %s1958_s2 }
 0x802   :  { %1196 = vrot.lane.b32.xlu0 %v1179_v63, %s1956_s6  ;;  %v2745_v63 = vld [vmem:[#allocation15_spill] sm:$0xff] }
 0x805   :  { %1394 = vrot.lane.b32.xlu1 %v2561_v39, %s1958_s2 }
 0x806   :  { %1204 = vrot.lane.b32.xlu0 %v1183_v41, %s1956_s6 }
 0x809   :  { %1194 = vrot.lane.b32.xlu1 %v1178_v22, %s1956_s6 }
 0x80d   :  { %1198 = vrot.lane.b32.xlu1 %v1180_v0, %s1956_s6 }
 0x811   :  { %1200 = vrot.lane.b32.xlu1 %v1181_v3, %s1956_s6 }
 0x815   :  { %1202 = vrot.lane.b32.xlu1 %v1182_v24, %s1956_s6  ;;  %v2746_v24 = vld [vmem:[#allocation17_spill] sm:$0xff] }
 0x867   :  { %v1387_v42 = vpop.permute.xlu1 %1386 }
 0x868   :  { %v1389_v7 = vpop.permute.xlu0 %1388  ;;  %v1413_v53 = vsel %vm1406_vm4, %v1387_v42, 0.0 }
 0x869   :  { %1414 = vadd.xlane.f32.xlu0 %v1413_v53  ;;  %v1416_v61 = vsel %vm1406_vm4, %v1389_v7, 0.0 }
 0x86b   :  { %v1383_v19 = vpop.permute.xlu1 %1382 }
 0x86c   :  { %v1393_v6 = vpop.permute.xlu0 %1392  ;;  %v1407_v11 = vsel %vm1406_vm4, %v1383_v19, 0.0  ;;  %v2747_v19 = vld [vmem:[#allocation16_spill] sm:$0xff] }
 0x86d   :  { %1417 = vadd.xlane.f32.xlu0 %v1416_v61  ;;  %1408 = vadd.xlane.f32.xlu1 %v1407_v11  ;;  %v1422_v21 = vsel %vm1406_vm4, %v1393_v6, 0.0 }
 0x86f   :  { %v1385_v26 = vpop.permute.xlu1 %1384 }
 0x870   :  { %v1410_v58 = vsel %vm1406_vm4, %v1385_v26, 0.0  ;;  %v1397_v62 = vpop.permute.xlu0 %1396 }
 0x871   :  { %1411 = vadd.xlane.f32.xlu0 %v1410_v58  ;;  %v1428_v56 = vsel %vm1406_vm4, %v1397_v62, 0.0  ;;  %v2748_v58 = vld [vmem:[#allocation9_spill] sm:$0xff] }
 0x873   :  { %v1391_v46 = vpop.permute.xlu1 %1390 }
 0x874   :  { %v1419_v23 = vsel %vm1406_vm4, %v1391_v46, 0.0  ;;  %v2621_v49 = vpop.permute.xlu0 %1196 }
 0x875   :  { %1429 = vadd.xlane.f32.xlu0 %v1428_v56 }
 0x877   :  { %v1395_v40 = vpop.permute.xlu1 %1394 }
 0x878   :  { %v1425_v16 = vsel %vm1406_vm4, %v1395_v40, 0.0  ;;  %v2623_v44 = vpop.permute.xlu0 %1204 }
 0x879   :  { %1423 = vadd.xlane.f32.xlu0 %v1422_v21  ;;  %1426 = vadd.xlane.f32.xlu1 %v1425_v16  ;;  %v2749_v21 = vld [vmem:[#allocation18_spill] sm:$0xff] }
 0x87b   :  { %v2617_v47 = vpop.permute.xlu1 %1194 }
 0x87d   :  { %1420 = vadd.xlane.f32.xlu1 %v1419_v23  ;;  %v2750_v23 = vld [vmem:[#allocation13_spill] sm:$0xff] }
 0x87f   :  { %v2619_v48 = vpop.permute.xlu1 %1198 }
 0x883   :  { %v1201_v50 = vpop.permute.xlu1 %1200 }
 0x887   :  { %v2625_v15 = vpop.permute.xlu1 %1202 }
 0x88e   :  { %1206 = vrot.lane.b32.xlu1 %v1184_v32, %s1956_s6 }
 0x88f   :  { %1208 = vrot.lane.b32.xlu0 %v1185_v33, %s1956_s6 }
 0x892   :  { %1471 = vrot.lane.b32.xlu1 %v2385_v28, %s1960_s24 }
 0x893   :  { %1473 = vrot.lane.b32.xlu0 %v2387_v31, %s1960_s24 }
 0x896   :  { %1475 = vrot.lane.b32.xlu1 %v2391_v8, %s1960_s24 }
 0x897   :  { %1477 = vrot.lane.b32.xlu0 %v2383_v4, %s1960_s24 }
 0x89a   :  { %1479 = vrot.lane.b32.xlu1 %v2410_v9, %s1960_s24  ;;  %v1850_v9 = vpop.f32.mrf.mxu1 }
 0x89b   :  { %1481 = vrot.lane.b32.xlu0 %v2412_v5, %s1960_s24  ;;  %v1172_v6 = vmul.f32 %v2747_v19, %v1850_v9 }
 0x89c   :  { %v1139_v60 = vpop.f32.mrf.mxu1 }
 0x89d   :  { %v1170_v16 = vmul.f32 %v2749_v21, %v1139_v60 }
 0x89e   :  { %1483 = vrot.lane.b32.xlu1 %v2743_v30, %s1960_s24  ;;  %v1851_v57 = vpop.f32.mrf.mxu1 }
 0x89f   :  { %1485 = vrot.lane.b32.xlu0 %v2744_v35, %s1960_s24  ;;  %v1173_v41 = vmul.f32 %v2745_v63, %v1851_v57 }
 0x8a0   :  { %v1142_v14 = vpop.f32.mrf.mxu1 }
 0x8a1   :  { %v1171_v42 = vmul.f32 %v2746_v24, %v1142_v14 }
 0x8a3   :  { %v1219_v26 = vadd.f32 %v2621_v49, %v1171_v42  ;;  %v2751_v49 = vld [vmem:[#allocation11_spill] sm:$0xff] }
 0x8a5   :  { %v1231_v33 = vadd.f32 %v2748_v58, %v1219_v26 }
 0x8f2   :  { %v1415_v4 = vpop.xlane.xlu0 %1414 }
 0x8f3   :  { %1916 = vrcp.f32 %v1415_v4  ;;  %v2752_v4 = vld [vmem:[#allocation14_spill] sm:$0xff] }
 0x8f6   :  { %v1418_v28 = vpop.xlane.xlu0 %1417  ;;  %v1409_v31 = vpop.xlane.xlu1 %1408 }
 0x8f7   :  { %1918 = vrcp.f32 %v1418_v28 }
 0x8f8   :  { %1920 = vrcp.f32 %v1409_v31 }
 0x8fa   :  { %v1412_v8 = vpop.xlane.xlu0 %1411 }
 0x8fb   :  { %1922 = vrcp.f32 %v1412_v8 }
 0x8fe   :  { %v1430_v5 = vpop.xlane.xlu0 %1429 }
 0x900   :  { %v1917_v10 = vpop.eup %1916 }
 0x901   :  { %v1436_v38 = vmul.f32 %v1917_v10, %v2537_v29  ;;  %v1854_v29 = vpop.f32.mrf.mxu1 }
 0x902   :  { %v1424_v1 = vpop.xlane.xlu0 %1423  ;;  %v2628_v20 = vpop.xlane.xlu1 %1426 }
 0x903   :  { %1924 = vrcp.f32 %v1424_v1  ;;  %1566 = vrot.lane.b32.xlu1 %v1436_v38, %s1961_s25  ;;  %v1155_v0 = vpop.f32.mrf.mxu1 }
 0x904   :  { %v1919_v55 = vpop.eup %1918 }
 0x905   :  { %v1921_v27 = vpop.eup %1920  ;;  %v1438_v2 = vmul.f32 %v1919_v55, %v2539_v36  ;;  %v1855_v11 = vpop.f32.mrf.mxu1 }
 0x906   :  { %v1209_v54 = vpop.permute.xlu0 %1208  ;;  %v1421_v51 = vpop.xlane.xlu1 %1420  ;;  %v1432_v52 = vmul.f32 %v1921_v27, %v2543_v37  ;;  %v1177_v59 = vmul.f32 %v2750_v23, %v1855_v11 }
 0x907   :  { %1926 = vrcp.f32 %v1421_v51  ;;  %1568 = vrot.lane.b32.xlu0 %v1438_v2, %s1961_s25  ;;  %v1158_v32 = vpop.f32.mrf.mxu1 }
 0x908   :  { %v1923_v25 = vpop.eup %1922  ;;  %1562 = vrot.lane.b32.xlu1 %v1432_v52, %s1961_s25  ;;  %1928 = vrcp.f32 %v1430_v5  ;;  %v1225_v35 = vadd.f32 %v1209_v54, %v1177_v59  ;;  %v1175_v28 = vmul.f32 %v2752_v4, %v1158_v32  ;;  %v2753_v5 = vld [vmem:[#allocation12_spill] sm:$0xff] }
 0x909   :  { %v1434_v45 = vmul.f32 %v1923_v25, %v2549_v43  ;;  %v1221_v43 = vadd.f32 %v1201_v50, %v1173_v41  ;;  %1930 = vrcp.f32 %v2628_v20  ;;  %v1176_v50 = vmul.f32 %v2751_v49, %v1854_v29 }
 0x90a   :  { %v1474_v18 = vpop.permute.xlu0 %1473  ;;  %v1207_v34 = vpop.permute.xlu1 %1206  ;;  %v1237_v8 = vadd.f32 %v2748_v58, %v1225_v35  ;;  %v1174_v10 = vmul.f32 %v2753_v5, %v1155_v0 }
 0x90b   :  { %1497 = vst.msk [vmem:[#allocation4 + $0x8] sm:$0xff] %vm1495_vm5, %v1474_v18  ;;  %1564 = vrot.lane.b32.xlu0 %v1434_v45, %s1961_s25  ;;  %v1233_v62 = vadd.f32 %v2748_v58, %v1221_v43  ;;  %v1224_v9 = vadd.f32 %v1207_v34, %v1176_v50 }
 0x90c   :  { %1506 = vst.msk [vmem:[#allocation4 + $0x8] sm:$0xff] %vm1504_vm6, %v1474_v18  ;;  %v1222_v38 = vadd.f32 %v2625_v15, %v1174_v10 }
 0x90d   :  { %v1236_v1 = vadd.f32 %v2748_v58, %v1224_v9 }
 0x90e   :  { %v1478_v36 = vpop.permute.xlu0 %1477  ;;  %v1472_v37 = vpop.permute.xlu1 %1471 }
 0x90f   :  { %1499 = vst.msk [vmem:[#allocation4 + $0x18] sm:$0xff] %vm1495_vm5, %v1478_v36  ;;  %1496 = vst.msk [vmem:[#allocation4] sm:$0xff] %vm1495_vm5, %v1472_v37 }
 0x910   :  { %v1925_v22 = vpop.eup %1924  ;;  %1508 = vst.msk [vmem:[#allocation4 + $0x18] sm:$0xff] %vm1504_vm6, %v1478_v36  ;;  %1505 = vst.msk [vmem:[#allocation4] sm:$0xff] %vm1504_vm6, %v1472_v37 }
 0x911   :  { %v1442_v3 = vmul.f32 %v1925_v22, %v2545_v17  ;;  %v1220_v17 = vadd.f32 %v2619_v48, %v1172_v6 }
 0x912   :  { %v1482_v7 = vpop.permute.xlu0 %1481  ;;  %v1476_v53 = vpop.permute.xlu1 %1475 }
 0x913   :  { %1501 = vst.msk [vmem:[#allocation4 + $0x28] sm:$0xff] %vm1495_vm5, %v1482_v7  ;;  %1498 = vst.msk [vmem:[#allocation4 + $0x10] sm:$0xff] %vm1495_vm5, %v1476_v53  ;;  %1572 = vrot.lane.b32.xlu0 %v1442_v3, %s1961_s25  ;;  %v1232_v30 = vadd.f32 %v2748_v58, %v1220_v17 }
 0x914   :  { %v1927_v61 = vpop.eup %1926  ;;  %1510 = vst.msk [vmem:[#allocation4 + $0x28] sm:$0xff] %vm1504_vm6, %v1482_v7  ;;  %1507 = vst.msk [vmem:[#allocation4 + $0x10] sm:$0xff] %vm1504_vm6, %v1476_v53 }
 0x915   :  { %v1440_v46 = vmul.f32 %v1927_v61, %v2555_v12  ;;  %v1218_v12 = vadd.f32 %v2617_v47, %v1170_v16  ;;  %v1223_v47 = vadd.f32 %v2623_v44, %v1175_v28  ;;  %v1929_v20 = vpop.eup %1928  ;;  %v1234_v44 = vadd.f32 %v2748_v58, %v1222_v38 }
 0x916   :  { %v1486_v56 = vpop.permute.xlu0 %1485  ;;  %v1480_v40 = vpop.permute.xlu1 %1479  ;;  %v1446_v55 = vmul.f32 %v1929_v20, %v2551_v13 }
 0x917   :  { %1503 = vst.msk [vmem:[#allocation4 + $0x38] sm:$0xff] %vm1495_vm5, %v1486_v56  ;;  %1500 = vst.msk [vmem:[#allocation4 + $0x20] sm:$0xff] %vm1495_vm5, %v1480_v40  ;;  %1527 = vrot.lane.b32.xlu0 %v1233_v62, %s1962_s26  ;;  %1570 = vrot.lane.b32.xlu1 %v1440_v46, %s1961_s25  ;;  %v1230_v31 = vadd.f32 %v2748_v58, %v1218_v12  ;;  %v1235_v60 = vadd.f32 %v2748_v58, %v1223_v47  ;;  %v1931_v57 = vpop.eup %1930 }
 0x918   :  { %1512 = vst.msk [vmem:[#allocation4 + $0x38] sm:$0xff] %vm1504_vm6, %v1486_v56  ;;  %1509 = vst.msk [vmem:[#allocation4 + $0x20] sm:$0xff] %vm1504_vm6, %v1480_v40  ;;  %v1444_v27 = vmul.f32 %v1931_v57, %v2561_v39 }
 0x91a   :  { %v1484_v48 = vpop.permute.xlu1 %1483 }
 0x91b   :  { %1502 = vst.msk [vmem:[#allocation4 + $0x30] sm:$0xff] %vm1495_vm5, %v1484_v48  ;;  %1523 = vrot.lane.b32.xlu0 %v1231_v33, %s1962_s26  ;;  %1525 = vrot.lane.b32.xlu1 %v1232_v30, %s1962_s26 }
 0x91c   :  { %1511 = vst.msk [vmem:[#allocation4 + $0x30] sm:$0xff] %vm1504_vm6, %v1484_v48 }
 0x91f   :  { %1535 = vrot.lane.b32.xlu0 %v1237_v8, %s1962_s26  ;;  %1521 = vrot.lane.b32.xlu1 %v1230_v31, %s1962_s26 }
 0x923   :  { %1531 = vrot.lane.b32.xlu0 %v1235_v60, %s1962_s26  ;;  %1533 = vrot.lane.b32.xlu1 %v1236_v1, %s1962_s26 }
 0x927   :  { %1576 = vrot.lane.b32.xlu0 %v1446_v55, %s1961_s25  ;;  %1529 = vrot.lane.b32.xlu1 %v1234_v44, %s1962_s26 }
 0x92b   :  { %1574 = vrot.lane.b32.xlu1 %v1444_v27, %s1961_s25 }
 0x975   :  { %v1567_v2 = vpop.permute.xlu1 %1566 }
 0x979   :  { %v1569_v15 = vpop.permute.xlu0 %1568 }
 0x97a   :  { %v1563_v51 = vpop.permute.xlu1 %1562 }
 0x97d   :  { %v1565_v54 = vpop.permute.xlu0 %1564 }
 0x985   :  { %v1573_v52 = vpop.permute.xlu0 %1572 }
 0x989   :  { %v1528_v25 = vpop.permute.xlu0 %1527  ;;  %v1571_v14 = vpop.permute.xlu1 %1570 }
 0x98a   :  { %1549 = vst.msk [vmem:[#allocation4 + $0x18] sm:$0xff] %vm1545_vm7, %v1528_v25 }
 0x98b   :  { %1590 = vst.msk [vmem:[#allocation4 + $0x18] sm:$0xff] %vm1586_vm8, %v1569_v15 }
 0x98d   :  { %v1524_v13 = vpop.permute.xlu0 %1523  ;;  %v1526_v45 = vpop.permute.xlu1 %1525 }
 0x98e   :  { %1547 = vst.msk [vmem:[#allocation4 + $0x8] sm:$0xff] %vm1545_vm7, %v1524_v13  ;;  %1548 = vst.msk [vmem:[#allocation4 + $0x10] sm:$0xff] %vm1545_vm7, %v1526_v45 }
 0x98f   :  { %1588 = vst.msk [vmem:[#allocation4 + $0x8] sm:$0xff] %vm1586_vm8, %v1565_v54  ;;  %1589 = vst.msk [vmem:[#allocation4 + $0x10] sm:$0xff] %vm1586_vm8, %v1567_v2 }
 0x991   :  { %v1536_v39 = vpop.permute.xlu0 %1535  ;;  %v1522_v18 = vpop.permute.xlu1 %1521 }
 0x992   :  { %1553 = vst.msk [vmem:[#allocation4 + $0x38] sm:$0xff] %vm1545_vm7, %v1536_v39  ;;  %1546 = vst.msk [vmem:[#allocation4] sm:$0xff] %vm1545_vm7, %v1522_v18 }
 0x993   :  { %1587 = vst.msk [vmem:[#allocation4] sm:$0xff] %vm1586_vm8, %v1563_v51 }
 0x995   :  { %v1532_v34 = vpop.permute.xlu0 %1531  ;;  %v1534_v29 = vpop.permute.xlu1 %1533 }
 0x996   :  { %1551 = vst.msk [vmem:[#allocation4 + $0x28] sm:$0xff] %vm1545_vm7, %v1532_v34  ;;  %1552 = vst.msk [vmem:[#allocation4 + $0x30] sm:$0xff] %vm1545_vm7, %v1534_v29 }
 0x997   :  { %1592 = vst.msk [vmem:[#allocation4 + $0x28] sm:$0xff] %vm1586_vm8, %v1573_v52 }
 0x999   :  { %v1577_v36 = vpop.permute.xlu0 %1576  ;;  %v1530_v37 = vpop.permute.xlu1 %1529 }
 0x99a   :  { %1594 = vst.msk [vmem:[#allocation4 + $0x38] sm:$0xff] %vm1586_vm8, %v1577_v36 }
 0x99b   :  { %1550 = vst.msk [vmem:[#allocation4 + $0x20] sm:$0xff] %vm1545_vm7, %v1530_v37 }
 0x99c   :  { %1591 = vst.msk [vmem:[#allocation4 + $0x20] sm:$0xff] %vm1586_vm8, %v1571_v14 }
 0x99d   :  { %v1575_v63 = vpop.permute.xlu1 %1574 }
 0x99e   :  { %1593 = vst.msk [vmem:[#allocation4 + $0x30] sm:$0xff] %vm1586_vm8, %v1575_v63 }
 0x99f   :  { %1943 = shalt.err (!%p1940_p4)
}
 0x9a0   :  { %s1964_s7 = smov 128   ;;  %s1965_s29 = smov 8  }
 0x9a1   :  { %1606 = dma.vmem_to_hbm [thread:$0]  %s1601_s28, 1024, %s2718_s8, [#allocation5], %s1964_s7, %s1964_s7, %s1965_s29  }
 0x9a2   :  { %1954 = dma.done.wait [#allocation5], 1024  }
 0x9a3   :  { %1955 = vsyncadd [#allocation5], 4294966272 }
 0x9a4   :  { %1610 = vsyncpa [#allocation5], 1 }
 0x9a5   :  { %1611 = vsyncmov [#allocation3] }
 0x9a8   :  { %s1612_s10 = vpop.sfrf %1611 }
 0x9a9   :  { %p1684_p5 = scmp.ne.s32.totalorder %s1612_s10, 0 }
 0x9ab   :  { %1616 = shalt.err (%p1684_p5)  }

</bundles_post_ra>
